<compile_context>
chip_gen: v7x
topology: tpu7x:2x2x1
jax: 0.10.0
libtpu: 0.0.40
codegen_flags: <defaults>
</compile_context>

<pallas_src>
import functools

import jax
import jax.numpy as jnp
from jax.experimental import pallas as pl
from jax.experimental.pallas import tpu as pltpu


def _round_up(x, m):
    return ((x + m - 1) // m) * m


_VMEM_LIMIT = 32 * 1024 * 1024  # safe on v5e/v6e/v7x; tiles below use ~3 MiB


# ----------------------------------------------------------------------------
# Tiled, pipelined, batched matmul:  out[g] = act(A[g] @ B[g])
#   A: (G, M, K)  B: (G, K, N)  ->  (G, M, N) f32
#   bf16 MXU operands, f32 accumulation, K innermost with VMEM accumulator.
# ----------------------------------------------------------------------------
def _matmul_kernel(a_ref, b_ref, o_ref, acc_ref, *, act):
    k = pl.program_id(3)

    @pl.when(k == 0)
    def _():
        acc_ref[...] = jnp.zeros_like(acc_ref)

    acc_ref[...] += jnp.dot(a_ref[...], b_ref[...],
                            preferred_element_type=jnp.float32)

    @pl.when(k == pl.num_programs(3) - 1)
    def _():
        acc = acc_ref[...]
        if act == "tanh":
            acc = jnp.tanh(acc)
        o_ref[...] = acc.astype(o_ref.dtype)


def pallas_matmul_batched(a, b, act="none"):
    G, M, K = a.shape
    Gb, Kb, N = b.shape
    assert G == Gb and K == Kb

    TM = min(512, _round_up(M, 8))
    TN = min(256, _round_up(N, 128))
    TK = min(512, _round_up(K, 128))
    Mp, Kp, Np = _round_up(M, TM), _round_up(K, TK), _round_up(N, TN)

    a = a.astype(jnp.bfloat16)
    b = b.astype(jnp.bfloat16)
    if (Mp, Kp) != (M, K):
        a = jnp.pad(a, ((0, 0), (0, Mp - M), (0, Kp - K)))
    if (Kp, Np) != (K, N):
        b = jnp.pad(b, ((0, 0), (0, Kp - K), (0, Np - N)))

    grid = (G, Mp // TM, Np // TN, Kp // TK)
    out = pl.pallas_call(
        functools.partial(_matmul_kernel, act=act),
        grid_spec=pltpu.PrefetchScalarGridSpec(
            num_scalar_prefetch=0,
            grid=grid,
            in_specs=[
                pl.BlockSpec((None, TM, TK), lambda g, i, j, k: (g, i, k)),
                pl.BlockSpec((None, TK, TN), lambda g, i, j, k: (g, k, j)),
            ],
            out_specs=pl.BlockSpec((None, TM, TN), lambda g, i, j, k: (g, i, j)),
            scratch_shapes=[pltpu.VMEM((TM, TN), jnp.float32)],
        ),
        out_shape=jax.ShapeDtypeStruct((G, Mp, Np), jnp.float32),
        compiler_params=pltpu.CompilerParams(
            dimension_semantics=("parallel", "parallel", "parallel", "arbitrary"),
            vmem_limit_bytes=_VMEM_LIMIT,
        ),
    )(a, b)
    return out[:, :M, :N]


# ----------------------------------------------------------------------------
# Tiled BatchNorm (training-mode biased batch stats) + ReLU on (M, C)
# ----------------------------------------------------------------------------
def _bn_stats_kernel(x_ref, sum_ref, ssq_ref):
    @pl.when(pl.program_id(0) == 0)
    def _():
        sum_ref[...] = jnp.zeros_like(sum_ref)
        ssq_ref[...] = jnp.zeros_like(ssq_ref)

    x = x_ref[...].astype(jnp.float32)
    sum_ref[...] += jnp.sum(x, axis=0, keepdims=True)
    ssq_ref[...] += jnp.sum(x * x, axis=0, keepdims=True)


def _bn_apply_kernel(x_ref, g_ref, b_ref, sum_ref, ssq_ref, o_ref, *, inv_m, eps):
    x = x_ref[...].astype(jnp.float32)
    mean = sum_ref[...] * inv_m
    var = jnp.maximum(ssq_ref[...] * inv_m - mean * mean, 0.0)
    scale = g_ref[...] * jax.lax.rsqrt(var + eps)
    shift = b_ref[...] - mean * scale
    o_ref[...] = jnp.maximum(x * scale + shift, 0.0).astype(o_ref.dtype)


# TODO(synk): fuse the sum/sumsq accumulation into the matmul epilogue to save
# one full HBM read of the activation per layer.
def pallas_bn_relu(x2d, gamma, beta, eps=1e-5):
    M, C = x2d.shape
    TR = min(512, _round_up(M, 8))
    Mp = _round_up(M, TR)
    if Mp != M:
        x2d = jnp.pad(x2d, ((0, Mp - M), (0, 0)))
    g = gamma.reshape(1, C).astype(jnp.float32)
    b = beta.reshape(1, C).astype(jnp.float32)
    grid = (Mp // TR,)

    # pass 1: per-channel sum / sum-of-squares accumulated across row tiles
    s, ss = pl.pallas_call(
        _bn_stats_kernel,
        grid_spec=pltpu.PrefetchScalarGridSpec(
            num_scalar_prefetch=0,
            grid=grid,
            in_specs=[pl.BlockSpec((TR, C), lambda i: (i, 0))],
            out_specs=(pl.BlockSpec((1, C), lambda i: (0, 0)),
                       pl.BlockSpec((1, C), lambda i: (0, 0))),
        ),
        out_shape=(jax.ShapeDtypeStruct((1, C), jnp.float32),
                   jax.ShapeDtypeStruct((1, C), jnp.float32)),
        compiler_params=pltpu.CompilerParams(
            dimension_semantics=("arbitrary",),
            vmem_limit_bytes=_VMEM_LIMIT,
        ),
    )(x2d)

    # pass 2: normalize + ReLU, independent row tiles
    out = pl.pallas_call(
        functools.partial(_bn_apply_kernel, inv_m=1.0 / M, eps=eps),
        grid_spec=pltpu.PrefetchScalarGridSpec(
            num_scalar_prefetch=0,
            grid=grid,
            in_specs=[pl.BlockSpec((TR, C), lambda i: (i, 0)),
                      pl.BlockSpec((1, C), lambda i: (0, 0)),
                      pl.BlockSpec((1, C), lambda i: (0, 0)),
                      pl.BlockSpec((1, C), lambda i: (0, 0)),
                      pl.BlockSpec((1, C), lambda i: (0, 0))],
            out_specs=pl.BlockSpec((TR, C), lambda i: (i, 0)),
        ),
        out_shape=jax.ShapeDtypeStruct((Mp, C), jnp.float32),
        compiler_params=pltpu.CompilerParams(
            dimension_semantics=("parallel",),
            vmem_limit_bytes=_VMEM_LIMIT,
        ),
    )(x2d, g, b, s, ss)
    return out[:M]


# ----------------------------------------------------------------------------
# Transposed convolutions (sub-pixel decomposition; glue in JAX, matmul Pallas)
# ----------------------------------------------------------------------------
# For output row oh = 2*i + p (stride 2, pad 1, kernel 4):
#   p=0 -> taps kh in {1,3} with input-row offsets {0,-1}
#   p=1 -> taps kh in {0,2} with input-row offsets {+1,0}
_ROW_TAPS = {0: ((1, 0), (3, -1)), 1: ((0, 1), (2, 0))}
_COL_TAPS = {0: ((1, 0), (3, -1)), 1: ((0, 1), (2, 0))}


def conv_transpose_1x1_k4s1p0(x_nchw, w):
    """ConvTranspose2d(K, Cout, 4, 1, 0) on a (B, K, 1, 1) input -> pure matmul."""
    B, K = x_nchw.shape[0], x_nchw.shape[1]
    Cout = w.shape[1]
    x2d = x_nchw.reshape(B, K)
    wmat = jnp.transpose(w, (0, 2, 3, 1)).reshape(K, 16 * Cout)   # (K, kh*kw*Cout)
    out = pallas_matmul_batched(x2d[None], wmat[None])[0]         # (B, 16*Cout)
    return out.reshape(B, 4, 4, Cout)                             # NHWC


# TODO(synk): fold the per-tap shifted-window gather into the matmul BlockSpecs
# (extra tap grid axis reading the padded input) to avoid materializing the
# 4x tap-stacked A in HBM at all.
def conv_transpose_k4s2p1(x_nhwc, w, act="none"):
    """ConvTranspose2d(Cin, Cout, 4, 2, 1): each output parity (p,q) touches
    only 4 of the 16 taps, so the layer is 4 matmuls (B*H*W,4*Cin)@(4*Cin,Cout),
    run as one batched pallas_call, then interleaved into (B, 2H, 2W, Cout)."""
    B, H, W, Cin = x_nhwc.shape
    Cout = w.shape[1]
    x = x_nhwc.astype(jnp.bfloat16)                 # cast at the MXU boundary
    xp = jnp.pad(x, ((0, 0), (1, 1), (1, 1), (0, 0)))

    a_list, w_list = [], []
    for p in (0, 1):
        for q in (0, 1):
            patches, wtaps = [], []
            for kh, dh in _ROW_TAPS[p]:
                for kw, dw in _COL_TAPS[q]:
                    patches.append(xp[:, 1 + dh:1 + dh + H, 1 + dw:1 + dw + W, :])
                    wtaps.append(w[:, :, kh, kw])                  # (Cin, Cout)
            a_pq = jnp.stack(patches, axis=3).reshape(B * H * W, 4 * Cin)
            w_pq = jnp.stack(wtaps, axis=0).reshape(4 * Cin, Cout)
            a_list.append(a_pq)
            w_list.append(w_pq)

    a_all = jnp.stack(a_list, axis=0)               # (4, B*H*W, 4*Cin)
    w_all = jnp.stack(w_list, axis=0)               # (4, 4*Cin, Cout)
    out4 = pallas_matmul_batched(a_all, w_all, act=act)            # (4, B*H*W, Cout)
    out4 = out4.reshape(2, 2, B, H, W, Cout)
    # [p, q, b, i, j, c] -> [b, 2i+p, 2j+q, c]
    out = jnp.transpose(out4, (2, 3, 0, 4, 1, 5)).reshape(B, 2 * H, 2 * W, Cout)
    return out


# ----------------------------------------------------------------------------
# Generator: parameter construction + forward
# ----------------------------------------------------------------------------
def init_generator_params(key, isize, nc, nz, ngf):
    assert isize % 16 == 0, "image size has to be a multiple of 16"
    cngf, tisize = ngf // 2, 4
    while tisize != isize:
        cngf *= 2
        tisize *= 2

    keys = jax.random.split(key, 16)
    ki = 0
    layers = []

    def w_init(k, shape, scale=0.05):
        return jax.random.normal(k, shape, jnp.float32) * scale

    # ConvTranspose2d(nz, cngf, 4, 1, 0) + BN + ReLU
    layers.append(("deconv_first", w_init(keys[ki], (nz, cngf, 4, 4)))); ki += 1
    layers.append(("bn", jnp.ones((cngf,), jnp.float32), jnp.zeros((cngf,), jnp.float32)))

    csize = 4
    while csize < isize // 2:
        layers.append(("deconv", w_init(keys[ki], (cngf, cngf // 2, 4, 4)))); ki += 1
        layers.append(("bn", jnp.ones((cngf // 2,), jnp.float32),
                       jnp.zeros((cngf // 2,), jnp.float32)))
        cngf //= 2
        csize *= 2

    # final ConvTranspose2d(cngf, nc, 4, 2, 1) + Tanh
    layers.append(("deconv_last", w_init(keys[ki], (cngf, nc, 4, 4)))); ki += 1
    return layers


def generator_forward(params, x_nchw):
    h = None
    for entry in params:
        kind = entry[0]
        if kind == "deconv_first":
            h = conv_transpose_1x1_k4s1p0(x_nchw, entry[1])
        elif kind == "bn":
            B, H, W, C = h.shape
            h = pallas_bn_relu(h.reshape(B * H * W, C), entry[1], entry[2]).reshape(B, H, W, C)
        elif kind == "deconv":
            h = conv_transpose_k4s2p1(h, entry[1])
        elif kind == "deconv_last":
            h = conv_transpose_k4s2p1(h, entry[1], act="tanh")
    # back to PyTorch NCHW
    return jnp.transpose(h, (0, 3, 1, 2))


# ----------------------------------------------------------------------------
if __name__ == "__main__":
    isize, nc, nz, ngf, batch = 16, 3, 8, 8, 2   # small but valid (isize % 16 == 0)
    key = jax.random.PRNGKey(0)
    kp, kx = jax.random.split(key)

    params = init_generator_params(kp, isize, nc, nz, ngf)
    x = jax.random.normal(kx, (batch, nz, 1, 1), jnp.float32)  # noise (B, nz, 1, 1)

    fwd = jax.jit(lambda inp: generator_forward(params, inp))
    out = jax.block_until_ready(fwd(x))

    assert out.shape == (batch, nc, isize, isize), out.shape
    assert bool(jnp.all(jnp.isfinite(out)))
    assert bool(jnp.all(jnp.abs(out) <= 1.0))  # tanh output range
    print("KERNEL_OK")
</pallas_src>

<mosaic_0001>
module attributes {stable_mosaic.version = 11 : i64} {
  func.func @_bn_stats_kernel(%arg0: i32, %arg1: memref<32x16xf32, #tpu.memory_space<vmem>>, %arg2: memref<1x16xf32, #tpu.memory_space<vmem>>, %arg3: memref<1x16xf32, #tpu.memory_space<vmem>>) attributes {dimension_semantics = [#tpu.dimension_semantics<arbitrary>], iteration_bounds = array<i64: 1>, scalar_prefetch = 0 : i64, scratch_operands = 0 : i64, tpu.core_type = #tpu.core_type<tc>, window_params = [{transform_indices = @transform_0, window_bounds = array<i64: 32, 16>}, {pipeline_mode = #tpu.pipeline_mode<synchronous>, transform_indices = @transform_1, window_bounds = array<i64: 1, 16>}, {pipeline_mode = #tpu.pipeline_mode<synchronous>, transform_indices = @transform_2, window_bounds = array<i64: 1, 16>}]} {
    %c0_i32 = arith.constant 0 : i32
    %0 = arith.cmpi eq, %arg0, %c0_i32 : i32
    %1 = arith.extui %0 : i1 to i32
    %c0_i32_0 = arith.constant 0 : i32
    %2 = arith.cmpi ne, %1, %c0_i32_0 : i32
    scf.if %2 {
      %cst_11 = arith.constant 0.000000e+00 : f32
      %15 = vector.broadcast %cst_11 : f32 to vector<1x16xf32>
      %c0_12 = arith.constant 0 : index
      %c0_13 = arith.constant 0 : index
      %16 = vector.load %arg2[%c0_12, %c0_13] : memref<1x16xf32, #tpu.memory_space<vmem>>, vector<1x16xf32>
      tpu.vector_store %arg2[%c0_12, %c0_13], %15 {strides = array<i32>} : memref<1x16xf32, #tpu.memory_space<vmem>>, vector<1x16xf32>,
      %cst_14 = arith.constant 0.000000e+00 : f32
      %17 = vector.broadcast %cst_14 : f32 to vector<1x16xf32>
      %c0_15 = arith.constant 0 : index
      %c0_16 = arith.constant 0 : index
      %18 = vector.load %arg3[%c0_15, %c0_16] : memref<1x16xf32, #tpu.memory_space<vmem>>, vector<1x16xf32>
      tpu.vector_store %arg3[%c0_15, %c0_16], %17 {strides = array<i32>} : memref<1x16xf32, #tpu.memory_space<vmem>>, vector<1x16xf32>,
    } else {
    }
    %c0 = arith.constant 0 : index
    %c0_1 = arith.constant 0 : index
    %3 = vector.load %arg1[%c0, %c0_1] : memref<32x16xf32, #tpu.memory_space<vmem>>, vector<32x16xf32>
    %c0_2 = arith.constant 0 : index
    %c0_3 = arith.constant 0 : index
    %4 = vector.load %arg2[%c0_2, %c0_3] : memref<1x16xf32, #tpu.memory_space<vmem>>, vector<1x16xf32>
    %cst = arith.constant dense<0.000000e+00> : vector<16xf32>
    %5 = vector.multi_reduction <add>, %3, %cst [0] : vector<32x16xf32> to vector<16xf32>
    %6 = vector.shape_cast %5 : vector<16xf32> to vector<1x16xf32>
    %7 = arith.addf %4, %6 : vector<1x16xf32>
    %c0_4 = arith.constant 0 : index
    %c0_5 = arith.constant 0 : index
    %8 = vector.load %arg2[%c0_4, %c0_5] : memref<1x16xf32, #tpu.memory_space<vmem>>, vector<1x16xf32>
    tpu.vector_store %arg2[%c0_4, %c0_5], %7 {strides = array<i32>} : memref<1x16xf32, #tpu.memory_space<vmem>>, vector<1x16xf32>,
    %c0_6 = arith.constant 0 : index
    %c0_7 = arith.constant 0 : index
    %9 = vector.load %arg3[%c0_6, %c0_7] : memref<1x16xf32, #tpu.memory_space<vmem>>, vector<1x16xf32>
    %10 = arith.mulf %3, %3 : vector<32x16xf32>
    %cst_8 = arith.constant dense<0.000000e+00> : vector<16xf32>
    %11 = vector.multi_reduction <add>, %10, %cst_8 [0] : vector<32x16xf32> to vector<16xf32>
    %12 = vector.shape_cast %11 : vector<16xf32> to vector<1x16xf32>
    %13 = arith.addf %9, %12 : vector<1x16xf32>
    %c0_9 = arith.constant 0 : index
    %c0_10 = arith.constant 0 : index
    %14 = vector.load %arg3[%c0_9, %c0_10] : memref<1x16xf32, #tpu.memory_space<vmem>>, vector<1x16xf32>
    tpu.vector_store %arg3[%c0_9, %c0_10], %13 {strides = array<i32>} : memref<1x16xf32, #tpu.memory_space<vmem>>, vector<1x16xf32>,
    return
  }
  func.func @transform_0(%arg0: i32) -> (i32, i32) {
    %c0_i32 = arith.constant 0 : i32
    %c0_i32_0 = arith.constant 0 : i32
    return %arg0, %c0_i32 : i32, i32
  }
  func.func @transform_1(%arg0: i32) -> (i32, i32) {
    %c0_i32 = arith.constant 0 : i32
    %c0_i32_0 = arith.constant 0 : i32
    %c0_i32_1 = arith.constant 0 : i32
    return %c0_i32, %c0_i32_0 : i32, i32
  }
  func.func @transform_2(%arg0: i32) -> (i32, i32) {
    %c0_i32 = arith.constant 0 : i32
    %c0_i32_0 = arith.constant 0 : i32
    %c0_i32_1 = arith.constant 0 : i32
    return %c0_i32, %c0_i32_0 : i32, i32
  }
}

module attributes {stable_mosaic.version = 11 : i64} {
  func.func @_bn_apply_kernel(%arg0: i32, %arg1: memref<32x16xf32, #tpu.memory_space<vmem>>, %arg2: memref<1x16xf32, #tpu.memory_space<vmem>>, %arg3: memref<1x16xf32, #tpu.memory_space<vmem>>, %arg4: memref<1x16xf32, #tpu.memory_space<vmem>>, %arg5: memref<1x16xf32, #tpu.memory_space<vmem>>, %arg6: memref<32x16xf32, #tpu.memory_space<vmem>>) attributes {dimension_semantics = [#tpu.dimension_semantics<parallel>], iteration_bounds = array<i64: 1>, scalar_prefetch = 0 : i64, scratch_operands = 0 : i64, tpu.core_type = #tpu.core_type<tc>, window_params = [{transform_indices = @transform_0, window_bounds = array<i64: 32, 16>}, {pipeline_mode = #tpu.pipeline_mode<synchronous>, transform_indices = @transform_1, window_bounds = array<i64: 1, 16>}, {pipeline_mode = #tpu.pipeline_mode<synchronous>, transform_indices = @transform_2, window_bounds = array<i64: 1, 16>}, {pipeline_mode = #tpu.pipeline_mode<synchronous>, transform_indices = @transform_3, window_bounds = array<i64: 1, 16>}, {pipeline_mode = #tpu.pipeline_mode<synchronous>, transform_indices = @transform_4, window_bounds = array<i64: 1, 16>}, {transform_indices = @transform_5, window_bounds = array<i64: 32, 16>}]} {
    %c0 = arith.constant 0 : index
    %c0_0 = arith.constant 0 : index
    %0 = vector.load %arg1[%c0, %c0_0] : memref<32x16xf32, #tpu.memory_space<vmem>>, vector<32x16xf32>
    %c0_1 = arith.constant 0 : index
    %c0_2 = arith.constant 0 : index
    %1 = vector.load %arg4[%c0_1, %c0_2] : memref<1x16xf32, #tpu.memory_space<vmem>>, vector<1x16xf32>
    %cst = arith.constant 3.125000e-02 : f32
    %2 = vector.broadcast %cst : f32 to vector<1x16xf32>
    %3 = arith.mulf %1, %2 : vector<1x16xf32>
    %c0_3 = arith.constant 0 : index
    %c0_4 = arith.constant 0 : index
    %4 = vector.load %arg5[%c0_3, %c0_4] : memref<1x16xf32, #tpu.memory_space<vmem>>, vector<1x16xf32>
    %cst_5 = arith.constant 3.125000e-02 : f32
    %5 = vector.broadcast %cst_5 : f32 to vector<1x16xf32>
    %6 = arith.mulf %4, %5 : vector<1x16xf32>
    %7 = arith.mulf %3, %3 : vector<1x16xf32>
    %8 = arith.subf %6, %7 : vector<1x16xf32>
    %cst_6 = arith.constant 0.000000e+00 : f32
    %9 = vector.broadcast %cst_6 : f32 to vector<1x16xf32>
    %10 = arith.maximumf %8, %9 : vector<1x16xf32>
    %c0_7 = arith.constant 0 : index
    %c0_8 = arith.constant 0 : index
    %11 = vector.load %arg2[%c0_7, %c0_8] : memref<1x16xf32, #tpu.memory_space<vmem>>, vector<1x16xf32>
    %cst_9 = arith.constant 9.99999974E-6 : f32
    %12 = vector.broadcast %cst_9 : f32 to vector<1x16xf32>
    %13 = arith.addf %10, %12 : vector<1x16xf32>
    %14 = math.rsqrt %13 : vector<1x16xf32>
    %15 = arith.mulf %11, %14 : vector<1x16xf32>
    %c0_10 = arith.constant 0 : index
    %c0_11 = arith.constant 0 : index
    %16 = vector.load %arg3[%c0_10, %c0_11] : memref<1x16xf32, #tpu.memory_space<vmem>>, vector<1x16xf32>
    %17 = arith.mulf %3, %15 : vector<1x16xf32>
    %18 = arith.subf %16, %17 : vector<1x16xf32>
    %19 = vector.broadcast %15 : vector<1x16xf32> to vector<32x16xf32>
    %20 = arith.mulf %0, %19 : vector<32x16xf32>
    %21 = vector.broadcast %18 : vector<1x16xf32> to vector<32x16xf32>
    %22 = arith.addf %20, %21 : vector<32x16xf32>
    %cst_12 = arith.constant 0.000000e+00 : f32
    %23 = vector.broadcast %cst_12 : f32 to vector<32x16xf32>
    %24 = arith.maximumf %22, %23 : vector<32x16xf32>
    %c0_13 = arith.constant 0 : index
    %c0_14 = arith.constant 0 : index
    %25 = vector.load %arg6[%c0_13, %c0_14] : memref<32x16xf32, #tpu.memory_space<vmem>>, vector<32x16xf32>
    tpu.vector_store %arg6[%c0_13, %c0_14], %24 {strides = array<i32>} : memref<32x16xf32, #tpu.memory_space<vmem>>, vector<32x16xf32>,
    return
  }
  func.func @transform_0(%arg0: i32) -> (i32, i32) {
    %c0_i32 = arith.constant 0 : i32
    %c0_i32_0 = arith.constant 0 : i32
    return %arg0, %c0_i32 : i32, i32
  }
  func.func @transform_1(%arg0: i32) -> (i32, i32) {
    %c0_i32 = arith.constant 0 : i32
    %c0_i32_0 = arith.constant 0 : i32
    %c0_i32_1 = arith.constant 0 : i32
    return %c0_i32, %c0_i32_0 : i32, i32
  }
  func.func @transform_2(%arg0: i32) -> (i32, i32) {
    %c0_i32 = arith.constant 0 : i32
    %c0_i32_0 = arith.constant 0 : i32
    %c0_i32_1 = arith.constant 0 : i32
    return %c0_i32, %c0_i32_0 : i32, i32
  }
  func.func @transform_3(%arg0: i32) -> (i32, i32) {
    %c0_i32 = arith.constant 0 : i32
    %c0_i32_0 = arith.constant 0 : i32
    %c0_i32_1 = arith.constant 0 : i32
    return %c0_i32, %c0_i32_0 : i32, i32
  }
  func.func @transform_4(%arg0: i32) -> (i32, i32) {
    %c0_i32 = arith.constant 0 : i32
    %c0_i32_0 = arith.constant 0 : i32
    %c0_i32_1 = arith.constant 0 : i32
    return %c0_i32, %c0_i32_0 : i32, i32
  }
  func.func @transform_5(%arg0: i32) -> (i32, i32) {
    %c0_i32 = arith.constant 0 : i32
    %c0_i32_0 = arith.constant 0 : i32
    return %arg0, %c0_i32 : i32, i32
  }
}

module attributes {stable_mosaic.version = 11 : i64} {
  func.func @_matmul_kernel(%arg0: i32, %arg1: i32, %arg2: i32, %arg3: i32, %arg4: memref<1x8x128xbf16, #tpu.memory_space<vmem>>, %arg5: memref<1x128x256xbf16, #tpu.memory_space<vmem>>, %arg6: memref<1x8x256xf32, #tpu.memory_space<vmem>>, %arg7: memref<8x256xf32, #tpu.memory_space<vmem>>) attributes {dimension_semantics = [#tpu.dimension_semantics<parallel>, #tpu.dimension_semantics<parallel>, #tpu.dimension_semantics<parallel>, #tpu.dimension_semantics<arbitrary>], iteration_bounds = array<i64: 1, 1, 1, 1>, scalar_prefetch = 0 : i64, scratch_operands = 1 : i64, tpu.core_type = #tpu.core_type<tc>, window_params = [{transform_indices = @transform_0, window_bounds = array<i64: 1, 8, 128>}, {transform_indices = @transform_1, window_bounds = array<i64: 1, 128, 256>}, {transform_indices = @transform_2, window_bounds = array<i64: 1, 8, 256>}]} {
    %c0_i32 = arith.constant 0 : i32
    %0 = arith.cmpi eq, %arg3, %c0_i32 : i32
    %1 = arith.extui %0 : i1 to i32
    %c0_i32_0 = arith.constant 0 : i32
    %2 = arith.cmpi ne, %1, %c0_i32_0 : i32
    scf.if %2 {
      %cst_12 = arith.constant 0.000000e+00 : f32
      %14 = vector.broadcast %cst_12 : f32 to vector<8x256xf32>
      %c0_13 = arith.constant 0 : index
      %c0_14 = arith.constant 0 : index
      %15 = vector.load %arg7[%c0_13, %c0_14] : memref<8x256xf32, #tpu.memory_space<vmem>>, vector<8x256xf32>
      tpu.vector_store %arg7[%c0_13, %c0_14], %14 {strides = array<i32>} : memref<8x256xf32, #tpu.memory_space<vmem>>, vector<8x256xf32>,
    } else {
    }
    %c0 = arith.constant 0 : index
    %c0_1 = arith.constant 0 : index
    %3 = vector.load %arg7[%c0, %c0_1] : memref<8x256xf32, #tpu.memory_space<vmem>>, vector<8x256xf32>
    %c0_2 = arith.constant 0 : index
    %c0_3 = arith.constant 0 : index
    %c0_4 = arith.constant 0 : index
    %4 = vector.load %arg4[%c0_2, %c0_3, %c0_4] : memref<1x8x128xbf16, #tpu.memory_space<vmem>>, vector<1x8x128xbf16>
    %5 = vector.shape_cast %4 : vector<1x8x128xbf16> to vector<8x128xbf16>
    %c0_5 = arith.constant 0 : index
    %c0_6 = arith.constant 0 : index
    %c0_7 = arith.constant 0 : index
    %6 = vector.load %arg5[%c0_5, %c0_6, %c0_7] : memref<1x128x256xbf16, #tpu.memory_space<vmem>>, vector<1x128x256xbf16>
    %7 = vector.shape_cast %6 : vector<1x128x256xbf16> to vector<128x256xbf16>
    %cst = arith.constant dense<0.000000e+00> : vector<8x256xf32>
    %8 = tpu.matmul %5, %7, %cst {dimension_numbers = #tpu.dot_dimension_numbers<[1], [0], [0], [1], [0, 0, 1, 1], [], []>} : vector<8x128xbf16>, vector<128x256xbf16>, vector<8x256xf32> -> vector<8x256xf32>
    %9 = arith.addf %3, %8 : vector<8x256xf32>
    %c0_8 = arith.constant 0 : index
    %c0_9 = arith.constant 0 : index
    %10 = vector.load %arg7[%c0_8, %c0_9] : memref<8x256xf32, #tpu.memory_space<vmem>>, vector<8x256xf32>
    tpu.vector_store %arg7[%c0_8, %c0_9], %9 {strides = array<i32>} : memref<8x256xf32, #tpu.memory_space<vmem>>, vector<8x256xf32>,
    %c0_i32_10 = arith.constant 0 : i32
    %11 = arith.cmpi eq, %arg3, %c0_i32_10 : i32
    %12 = arith.extui %11 : i1 to i32
    %c0_i32_11 = arith.constant 0 : i32
    %13 = arith.cmpi ne, %12, %c0_i32_11 : i32
    scf.if %13 {
      %c0_12 = arith.constant 0 : index
      %c0_13 = arith.constant 0 : index
      %14 = vector.load %arg7[%c0_12, %c0_13] : memref<8x256xf32, #tpu.memory_space<vmem>>, vector<8x256xf32>
      %c0_14 = arith.constant 0 : index
      %c0_15 = arith.constant 0 : index
      %c0_16 = arith.constant 0 : index
      %15 = vector.load %arg6[%c0_14, %c0_15, %c0_16] : memref<1x8x256xf32, #tpu.memory_space<vmem>>, vector<1x8x256xf32>
      %16 = vector.shape_cast %15 : vector<1x8x256xf32> to vector<8x256xf32>
      %17 = vector.shape_cast %14 : vector<8x256xf32> to vector<1x8x256xf32>
      tpu.vector_store %arg6[%c0_14, %c0_15, %c0_16], %17 {strides = array<i32>} : memref<1x8x256xf32, #tpu.memory_space<vmem>>, vector<1x8x256xf32>,
    } else {
    }
    return
  }
  func.func @transform_0(%arg0: i32, %arg1: i32, %arg2: i32, %arg3: i32) -> (i32, i32, i32) {
    %c0_i32 = arith.constant 0 : i32
    return %arg0, %arg1, %arg3 : i32, i32, i32
  }
  func.func @transform_1(%arg0: i32, %arg1: i32, %arg2: i32, %arg3: i32) -> (i32, i32, i32) {
    %c0_i32 = arith.constant 0 : i32
    return %arg0, %arg3, %arg2 : i32, i32, i32
  }
  func.func @transform_2(%arg0: i32, %arg1: i32, %arg2: i32, %arg3: i32) -> (i32, i32, i32) {
    %c0_i32 = arith.constant 0 : i32
    return %arg0, %arg1, %arg2 : i32, i32, i32
  }
}

module attributes {stable_mosaic.version = 11 : i64} {
  func.func @_matmul_kernel(%arg0: i32, %arg1: i32, %arg2: i32, %arg3: i32, %arg4: memref<1x32x128xbf16, #tpu.memory_space<vmem>>, %arg5: memref<1x128x128xbf16, #tpu.memory_space<vmem>>, %arg6: memref<1x32x128xf32, #tpu.memory_space<vmem>>, %arg7: memref<32x128xf32, #tpu.memory_space<vmem>>) attributes {dimension_semantics = [#tpu.dimension_semantics<parallel>, #tpu.dimension_semantics<parallel>, #tpu.dimension_semantics<parallel>, #tpu.dimension_semantics<arbitrary>], iteration_bounds = array<i64: 4, 1, 1, 1>, scalar_prefetch = 0 : i64, scratch_operands = 1 : i64, tpu.core_type = #tpu.core_type<tc>, window_params = [{transform_indices = @transform_0, window_bounds = array<i64: 1, 32, 128>}, {transform_indices = @transform_1, window_bounds = array<i64: 1, 128, 128>}, {transform_indices = @transform_2, window_bounds = array<i64: 1, 32, 128>}]} {
    %c0_i32 = arith.constant 0 : i32
    %0 = arith.cmpi eq, %arg3, %c0_i32 : i32
    %1 = arith.extui %0 : i1 to i32
    %c0_i32_0 = arith.constant 0 : i32
    %2 = arith.cmpi ne, %1, %c0_i32_0 : i32
    scf.if %2 {
      %cst_12 = arith.constant 0.000000e+00 : f32
      %14 = vector.broadcast %cst_12 : f32 to vector<32x128xf32>
      %c0_13 = arith.constant 0 : index
      %c0_14 = arith.constant 0 : index
      %15 = vector.load %arg7[%c0_13, %c0_14] : memref<32x128xf32, #tpu.memory_space<vmem>>, vector<32x128xf32>
      tpu.vector_store %arg7[%c0_13, %c0_14], %14 {strides = array<i32>} : memref<32x128xf32, #tpu.memory_space<vmem>>, vector<32x128xf32>,
    } else {
    }
    %c0 = arith.constant 0 : index
    %c0_1 = arith.constant 0 : index
    %3 = vector.load %arg7[%c0, %c0_1] : memref<32x128xf32, #tpu.memory_space<vmem>>, vector<32x128xf32>
    %c0_2 = arith.constant 0 : index
    %c0_3 = arith.constant 0 : index
    %c0_4 = arith.constant 0 : index
    %4 = vector.load %arg4[%c0_2, %c0_3, %c0_4] : memref<1x32x128xbf16, #tpu.memory_space<vmem>>, vector<1x32x128xbf16>
    %5 = vector.shape_cast %4 : vector<1x32x128xbf16> to vector<32x128xbf16>
    %c0_5 = arith.constant 0 : index
    %c0_6 = arith.constant 0 : index
    %c0_7 = arith.constant 0 : index
    %6 = vector.load %arg5[%c0_5, %c0_6, %c0_7] : memref<1x128x128xbf16, #tpu.memory_space<vmem>>, vector<1x128x128xbf16>
    %7 = vector.shape_cast %6 : vector<1x128x128xbf16> to vector<128x128xbf16>
    %cst = arith.constant dense<0.000000e+00> : vector<32x128xf32>
    %8 = tpu.matmul %5, %7, %cst {dimension_numbers = #tpu.dot_dimension_numbers<[1], [0], [0], [1], [0, 0, 1, 1], [], []>} : vector<32x128xbf16>, vector<128x128xbf16>, vector<32x128xf32> -> vector<32x128xf32>
    %9 = arith.addf %3, %8 : vector<32x128xf32>
    %c0_8 = arith.constant 0 : index
    %c0_9 = arith.constant 0 : index
    %10 = vector.load %arg7[%c0_8, %c0_9] : memref<32x128xf32, #tpu.memory_space<vmem>>, vector<32x128xf32>
    tpu.vector_store %arg7[%c0_8, %c0_9], %9 {strides = array<i32>} : memref<32x128xf32, #tpu.memory_space<vmem>>, vector<32x128xf32>,
    %c0_i32_10 = arith.constant 0 : i32
    %11 = arith.cmpi eq, %arg3, %c0_i32_10 : i32
    %12 = arith.extui %11 : i1 to i32
    %c0_i32_11 = arith.constant 0 : i32
    %13 = arith.cmpi ne, %12, %c0_i32_11 : i32
    scf.if %13 {
      %c0_12 = arith.constant 0 : index
      %c0_13 = arith.constant 0 : index
      %14 = vector.load %arg7[%c0_12, %c0_13] : memref<32x128xf32, #tpu.memory_space<vmem>>, vector<32x128xf32>
      %c0_14 = arith.constant 0 : index
      %c0_15 = arith.constant 0 : index
      %c0_16 = arith.constant 0 : index
      %15 = vector.load %arg6[%c0_14, %c0_15, %c0_16] : memref<1x32x128xf32, #tpu.memory_space<vmem>>, vector<1x32x128xf32>
      %16 = vector.shape_cast %15 : vector<1x32x128xf32> to vector<32x128xf32>
      %17 = vector.shape_cast %14 : vector<32x128xf32> to vector<1x32x128xf32>
      tpu.vector_store %arg6[%c0_14, %c0_15, %c0_16], %17 {strides = array<i32>} : memref<1x32x128xf32, #tpu.memory_space<vmem>>, vector<1x32x128xf32>,
    } else {
    }
    return
  }
  func.func @transform_0(%arg0: i32, %arg1: i32, %arg2: i32, %arg3: i32) -> (i32, i32, i32) {
    %c0_i32 = arith.constant 0 : i32
    return %arg0, %arg1, %arg3 : i32, i32, i32
  }
  func.func @transform_1(%arg0: i32, %arg1: i32, %arg2: i32, %arg3: i32) -> (i32, i32, i32) {
    %c0_i32 = arith.constant 0 : i32
    return %arg0, %arg3, %arg2 : i32, i32, i32
  }
  func.func @transform_2(%arg0: i32, %arg1: i32, %arg2: i32, %arg3: i32) -> (i32, i32, i32) {
    %c0_i32 = arith.constant 0 : i32
    return %arg0, %arg1, %arg2 : i32, i32, i32
  }
}

module attributes {stable_mosaic.version = 11 : i64} {
  func.func @_bn_stats_kernel(%arg0: i32, %arg1: memref<128x8xf32, #tpu.memory_space<vmem>>, %arg2: memref<1x8xf32, #tpu.memory_space<vmem>>, %arg3: memref<1x8xf32, #tpu.memory_space<vmem>>) attributes {dimension_semantics = [#tpu.dimension_semantics<arbitrary>], iteration_bounds = array<i64: 1>, scalar_prefetch = 0 : i64, scratch_operands = 0 : i64, tpu.core_type = #tpu.core_type<tc>, window_params = [{transform_indices = @transform_0, window_bounds = array<i64: 128, 8>}, {pipeline_mode = #tpu.pipeline_mode<synchronous>, transform_indices = @transform_1, window_bounds = array<i64: 1, 8>}, {pipeline_mode = #tpu.pipeline_mode<synchronous>, transform_indices = @transform_2, window_bounds = array<i64: 1, 8>}]} {
    %c0_i32 = arith.constant 0 : i32
    %0 = arith.cmpi eq, %arg0, %c0_i32 : i32
    %1 = arith.extui %0 : i1 to i32
    %c0_i32_0 = arith.constant 0 : i32
    %2 = arith.cmpi ne, %1, %c0_i32_0 : i32
    scf.if %2 {
      %cst_11 = arith.constant 0.000000e+00 : f32
      %15 = vector.broadcast %cst_11 : f32 to vector<1x8xf32>
      %c0_12 = arith.constant 0 : index
      %c0_13 = arith.constant 0 : index
      %16 = vector.load %arg2[%c0_12, %c0_13] : memref<1x8xf32, #tpu.memory_space<vmem>>, vector<1x8xf32>
      tpu.vector_store %arg2[%c0_12, %c0_13], %15 {strides = array<i32>} : memref<1x8xf32, #tpu.memory_space<vmem>>, vector<1x8xf32>,
      %cst_14 = arith.constant 0.000000e+00 : f32
      %17 = vector.broadcast %cst_14 : f32 to vector<1x8xf32>
      %c0_15 = arith.constant 0 : index
      %c0_16 = arith.constant 0 : index
      %18 = vector.load %arg3[%c0_15, %c0_16] : memref<1x8xf32, #tpu.memory_space<vmem>>, vector<1x8xf32>
      tpu.vector_store %arg3[%c0_15, %c0_16], %17 {strides = array<i32>} : memref<1x8xf32, #tpu.memory_space<vmem>>, vector<1x8xf32>,
    } else {
    }
    %c0 = arith.constant 0 : index
    %c0_1 = arith.constant 0 : index
    %3 = vector.load %arg1[%c0, %c0_1] : memref<128x8xf32, #tpu.memory_space<vmem>>, vector<128x8xf32>
    %c0_2 = arith.constant 0 : index
    %c0_3 = arith.constant 0 : index
    %4 = vector.load %arg2[%c0_2, %c0_3] : memref<1x8xf32, #tpu.memory_space<vmem>>, vector<1x8xf32>
    %cst = arith.constant dense<0.000000e+00> : vector<8xf32>
    %5 = vector.multi_reduction <add>, %3, %cst [0] : vector<128x8xf32> to vector<8xf32>
    %6 = vector.shape_cast %5 : vector<8xf32> to vector<1x8xf32>
    %7 = arith.addf %4, %6 : vector<1x8xf32>
    %c0_4 = arith.constant 0 : index
    %c0_5 = arith.constant 0 : index
    %8 = vector.load %arg2[%c0_4, %c0_5] : memref<1x8xf32, #tpu.memory_space<vmem>>, vector<1x8xf32>
    tpu.vector_store %arg2[%c0_4, %c0_5], %7 {strides = array<i32>} : memref<1x8xf32, #tpu.memory_space<vmem>>, vector<1x8xf32>,
    %c0_6 = arith.constant 0 : index
    %c0_7 = arith.constant 0 : index
    %9 = vector.load %arg3[%c0_6, %c0_7] : memref<1x8xf32, #tpu.memory_space<vmem>>, vector<1x8xf32>
    %10 = arith.mulf %3, %3 : vector<128x8xf32>
    %cst_8 = arith.constant dense<0.000000e+00> : vector<8xf32>
    %11 = vector.multi_reduction <add>, %10, %cst_8 [0] : vector<128x8xf32> to vector<8xf32>
    %12 = vector.shape_cast %11 : vector<8xf32> to vector<1x8xf32>
    %13 = arith.addf %9, %12 : vector<1x8xf32>
    %c0_9 = arith.constant 0 : index
    %c0_10 = arith.constant 0 : index
    %14 = vector.load %arg3[%c0_9, %c0_10] : memref<1x8xf32, #tpu.memory_space<vmem>>, vector<1x8xf32>
    tpu.vector_store %arg3[%c0_9, %c0_10], %13 {strides = array<i32>} : memref<1x8xf32, #tpu.memory_space<vmem>>, vector<1x8xf32>,
    return
  }
  func.func @transform_0(%arg0: i32) -> (i32, i32) {
    %c0_i32 = arith.constant 0 : i32
    %c0_i32_0 = arith.constant 0 : i32
    return %arg0, %c0_i32 : i32, i32
  }
  func.func @transform_1(%arg0: i32) -> (i32, i32) {
    %c0_i32 = arith.constant 0 : i32
    %c0_i32_0 = arith.constant 0 : i32
    %c0_i32_1 = arith.constant 0 : i32
    return %c0_i32, %c0_i32_0 : i32, i32
  }
  func.func @transform_2(%arg0: i32) -> (i32, i32) {
    %c0_i32 = arith.constant 0 : i32
    %c0_i32_0 = arith.constant 0 : i32
    %c0_i32_1 = arith.constant 0 : i32
    return %c0_i32, %c0_i32_0 : i32, i32
  }
}

module attributes {stable_mosaic.version = 11 : i64} {
  func.func @_bn_apply_kernel(%arg0: i32, %arg1: memref<128x8xf32, #tpu.memory_space<vmem>>, %arg2: memref<1x8xf32, #tpu.memory_space<vmem>>, %arg3: memref<1x8xf32, #tpu.memory_space<vmem>>, %arg4: memref<1x8xf32, #tpu.memory_space<vmem>>, %arg5: memref<1x8xf32, #tpu.memory_space<vmem>>, %arg6: memref<128x8xf32, #tpu.memory_space<vmem>>) attributes {dimension_semantics = [#tpu.dimension_semantics<parallel>], iteration_bounds = array<i64: 1>, scalar_prefetch = 0 : i64, scratch_operands = 0 : i64, tpu.core_type = #tpu.core_type<tc>, window_params = [{transform_indices = @transform_0, window_bounds = array<i64: 128, 8>}, {pipeline_mode = #tpu.pipeline_mode<synchronous>, transform_indices = @transform_1, window_bounds = array<i64: 1, 8>}, {pipeline_mode = #tpu.pipeline_mode<synchronous>, transform_indices = @transform_2, window_bounds = array<i64: 1, 8>}, {pipeline_mode = #tpu.pipeline_mode<synchronous>, transform_indices = @transform_3, window_bounds = array<i64: 1, 8>}, {pipeline_mode = #tpu.pipeline_mode<synchronous>, transform_indices = @transform_4, window_bounds = array<i64: 1, 8>}, {transform_indices = @transform_5, window_bounds = array<i64: 128, 8>}]} {
    %c0 = arith.constant 0 : index
    %c0_0 = arith.constant 0 : index
    %0 = vector.load %arg1[%c0, %c0_0] : memref<128x8xf32, #tpu.memory_space<vmem>>, vector<128x8xf32>
    %c0_1 = arith.constant 0 : index
    %c0_2 = arith.constant 0 : index
    %1 = vector.load %arg4[%c0_1, %c0_2] : memref<1x8xf32, #tpu.memory_space<vmem>>, vector<1x8xf32>
    %cst = arith.constant 7.812500e-03 : f32
    %2 = vector.broadcast %cst : f32 to vector<1x8xf32>
    %3 = arith.mulf %1, %2 : vector<1x8xf32>
    %c0_3 = arith.constant 0 : index
    %c0_4 = arith.constant 0 : index
    %4 = vector.load %arg5[%c0_3, %c0_4] : memref<1x8xf32, #tpu.memory_space<vmem>>, vector<1x8xf32>
    %cst_5 = arith.constant 7.812500e-03 : f32
    %5 = vector.broadcast %cst_5 : f32 to vector<1x8xf32>
    %6 = arith.mulf %4, %5 : vector<1x8xf32>
    %7 = arith.mulf %3, %3 : vector<1x8xf32>
    %8 = arith.subf %6, %7 : vector<1x8xf32>
    %cst_6 = arith.constant 0.000000e+00 : f32
    %9 = vector.broadcast %cst_6 : f32 to vector<1x8xf32>
    %10 = arith.maximumf %8, %9 : vector<1x8xf32>
    %c0_7 = arith.constant 0 : index
    %c0_8 = arith.constant 0 : index
    %11 = vector.load %arg2[%c0_7, %c0_8] : memref<1x8xf32, #tpu.memory_space<vmem>>, vector<1x8xf32>
    %cst_9 = arith.constant 9.99999974E-6 : f32
    %12 = vector.broadcast %cst_9 : f32 to vector<1x8xf32>
    %13 = arith.addf %10, %12 : vector<1x8xf32>
    %14 = math.rsqrt %13 : vector<1x8xf32>
    %15 = arith.mulf %11, %14 : vector<1x8xf32>
    %c0_10 = arith.constant 0 : index
    %c0_11 = arith.constant 0 : index
    %16 = vector.load %arg3[%c0_10, %c0_11] : memref<1x8xf32, #tpu.memory_space<vmem>>, vector<1x8xf32>
    %17 = arith.mulf %3, %15 : vector<1x8xf32>
    %18 = arith.subf %16, %17 : vector<1x8xf32>
    %19 = vector.broadcast %15 : vector<1x8xf32> to vector<128x8xf32>
    %20 = arith.mulf %0, %19 : vector<128x8xf32>
    %21 = vector.broadcast %18 : vector<1x8xf32> to vector<128x8xf32>
    %22 = arith.addf %20, %21 : vector<128x8xf32>
    %cst_12 = arith.constant 0.000000e+00 : f32
    %23 = vector.broadcast %cst_12 : f32 to vector<128x8xf32>
    %24 = arith.maximumf %22, %23 : vector<128x8xf32>
    %c0_13 = arith.constant 0 : index
    %c0_14 = arith.constant 0 : index
    %25 = vector.load %arg6[%c0_13, %c0_14] : memref<128x8xf32, #tpu.memory_space<vmem>>, vector<128x8xf32>
    tpu.vector_store %arg6[%c0_13, %c0_14], %24 {strides = array<i32>} : memref<128x8xf32, #tpu.memory_space<vmem>>, vector<128x8xf32>,
    return
  }
  func.func @transform_0(%arg0: i32) -> (i32, i32) {
    %c0_i32 = arith.constant 0 : i32
    %c0_i32_0 = arith.constant 0 : i32
    return %arg0, %c0_i32 : i32, i32
  }
  func.func @transform_1(%arg0: i32) -> (i32, i32) {
    %c0_i32 = arith.constant 0 : i32
    %c0_i32_0 = arith.constant 0 : i32
    %c0_i32_1 = arith.constant 0 : i32
    return %c0_i32, %c0_i32_0 : i32, i32
  }
  func.func @transform_2(%arg0: i32) -> (i32, i32) {
    %c0_i32 = arith.constant 0 : i32
    %c0_i32_0 = arith.constant 0 : i32
    %c0_i32_1 = arith.constant 0 : i32
    return %c0_i32, %c0_i32_0 : i32, i32
  }
  func.func @transform_3(%arg0: i32) -> (i32, i32) {
    %c0_i32 = arith.constant 0 : i32
    %c0_i32_0 = arith.constant 0 : i32
    %c0_i32_1 = arith.constant 0 : i32
    return %c0_i32, %c0_i32_0 : i32, i32
  }
  func.func @transform_4(%arg0: i32) -> (i32, i32) {
    %c0_i32 = arith.constant 0 : i32
    %c0_i32_0 = arith.constant 0 : i32
    %c0_i32_1 = arith.constant 0 : i32
    return %c0_i32, %c0_i32_0 : i32, i32
  }
  func.func @transform_5(%arg0: i32) -> (i32, i32) {
    %c0_i32 = arith.constant 0 : i32
    %c0_i32_0 = arith.constant 0 : i32
    return %arg0, %c0_i32 : i32, i32
  }
}

module attributes {stable_mosaic.version = 11 : i64} {
  func.func @_matmul_kernel(%arg0: i32, %arg1: i32, %arg2: i32, %arg3: i32, %arg4: memref<1x128x128xbf16, #tpu.memory_space<vmem>>, %arg5: memref<1x128x128xbf16, #tpu.memory_space<vmem>>, %arg6: memref<1x128x128xf32, #tpu.memory_space<vmem>>, %arg7: memref<128x128xf32, #tpu.memory_space<vmem>>) attributes {dimension_semantics = [#tpu.dimension_semantics<parallel>, #tpu.dimension_semantics<parallel>, #tpu.dimension_semantics<parallel>, #tpu.dimension_semantics<arbitrary>], iteration_bounds = array<i64: 4, 1, 1, 1>, scalar_prefetch = 0 : i64, scratch_operands = 1 : i64, tpu.core_type = #tpu.core_type<tc>, window_params = [{transform_indices = @transform_0, window_bounds = array<i64: 1, 128, 128>}, {transform_indices = @transform_1, window_bounds = array<i64: 1, 128, 128>}, {transform_indices = @transform_2, window_bounds = array<i64: 1, 128, 128>}]} {
    %c0_i32 = arith.constant 0 : i32
    %0 = arith.cmpi eq, %arg3, %c0_i32 : i32
    %1 = arith.extui %0 : i1 to i32
    %c0_i32_0 = arith.constant 0 : i32
    %2 = arith.cmpi ne, %1, %c0_i32_0 : i32
    scf.if %2 {
      %cst_12 = arith.constant 0.000000e+00 : f32
      %14 = vector.broadcast %cst_12 : f32 to vector<128x128xf32>
      %c0_13 = arith.constant 0 : index
      %c0_14 = arith.constant 0 : index
      %15 = vector.load %arg7[%c0_13, %c0_14] : memref<128x128xf32, #tpu.memory_space<vmem>>, vector<128x128xf32>
      tpu.vector_store %arg7[%c0_13, %c0_14], %14 {strides = array<i32>} : memref<128x128xf32, #tpu.memory_space<vmem>>, vector<128x128xf32>,
    } else {
    }
    %c0 = arith.constant 0 : index
    %c0_1 = arith.constant 0 : index
    %3 = vector.load %arg7[%c0, %c0_1] : memref<128x128xf32, #tpu.memory_space<vmem>>, vector<128x128xf32>
    %c0_2 = arith.constant 0 : index
    %c0_3 = arith.constant 0 : index
    %c0_4 = arith.constant 0 : index
    %4 = vector.load %arg4[%c0_2, %c0_3, %c0_4] : memref<1x128x128xbf16, #tpu.memory_space<vmem>>, vector<1x128x128xbf16>
    %5 = vector.shape_cast %4 : vector<1x128x128xbf16> to vector<128x128xbf16>
    %c0_5 = arith.constant 0 : index
    %c0_6 = arith.constant 0 : index
    %c0_7 = arith.constant 0 : index
    %6 = vector.load %arg5[%c0_5, %c0_6, %c0_7] : memref<1x128x128xbf16, #tpu.memory_space<vmem>>, vector<1x128x128xbf16>
    %7 = vector.shape_cast %6 : vector<1x128x128xbf16> to vector<128x128xbf16>
    %cst = arith.constant dense<0.000000e+00> : vector<128x128xf32>
    %8 = tpu.matmul %5, %7, %cst {dimension_numbers = #tpu.dot_dimension_numbers<[1], [0], [0], [1], [0, 0, 1, 1], [], []>} : vector<128x128xbf16>, vector<128x128xbf16>, vector<128x128xf32> -> vector<128x128xf32>
    %9 = arith.addf %3, %8 : vector<128x128xf32>
    %c0_8 = arith.constant 0 : index
    %c0_9 = arith.constant 0 : index
    %10 = vector.load %arg7[%c0_8, %c0_9] : memref<128x128xf32, #tpu.memory_space<vmem>>, vector<128x128xf32>
    tpu.vector_store %arg7[%c0_8, %c0_9], %9 {strides = array<i32>} : memref<128x128xf32, #tpu.memory_space<vmem>>, vector<128x128xf32>,
    %c0_i32_10 = arith.constant 0 : i32
    %11 = arith.cmpi eq, %arg3, %c0_i32_10 : i32
    %12 = arith.extui %11 : i1 to i32
    %c0_i32_11 = arith.constant 0 : i32
    %13 = arith.cmpi ne, %12, %c0_i32_11 : i32
    scf.if %13 {
      %c0_12 = arith.constant 0 : index
      %c0_13 = arith.constant 0 : index
      %14 = vector.load %arg7[%c0_12, %c0_13] : memref<128x128xf32, #tpu.memory_space<vmem>>, vector<128x128xf32>
      %15 = math.tanh %14 : vector<128x128xf32>
      %c0_14 = arith.constant 0 : index
      %c0_15 = arith.constant 0 : index
      %c0_16 = arith.constant 0 : index
      %16 = vector.load %arg6[%c0_14, %c0_15, %c0_16] : memref<1x128x128xf32, #tpu.memory_space<vmem>>, vector<1x128x128xf32>
      %17 = vector.shape_cast %16 : vector<1x128x128xf32> to vector<128x128xf32>
      %18 = vector.shape_cast %15 : vector<128x128xf32> to vector<1x128x128xf32>
      tpu.vector_store %arg6[%c0_14, %c0_15, %c0_16], %18 {strides = array<i32>} : memref<1x128x128xf32, #tpu.memory_space<vmem>>, vector<1x128x128xf32>,
    } else {
    }
    return
  }
  func.func @transform_0(%arg0: i32, %arg1: i32, %arg2: i32, %arg3: i32) -> (i32, i32, i32) {
    %c0_i32 = arith.constant 0 : i32
    return %arg0, %arg1, %arg3 : i32, i32, i32
  }
  func.func @transform_1(%arg0: i32, %arg1: i32, %arg2: i32, %arg3: i32) -> (i32, i32, i32) {
    %c0_i32 = arith.constant 0 : i32
    return %arg0, %arg3, %arg2 : i32, i32, i32
  }
  func.func @transform_2(%arg0: i32, %arg1: i32, %arg2: i32, %arg3: i32) -> (i32, i32, i32) {
    %c0_i32 = arith.constant 0 : i32
    return %arg0, %arg1, %arg2 : i32, i32, i32
  }
}

</mosaic_0001>

<bundles_post_ra>
// kernel: squeeze.1
= control target key start
LH: loop header
LB: loop body
LE: loop exit
PB: predicated region body
PF: predicated region fallthrough
CT: control target
= control target key end

     0   :  { %vm11_vm0 = vcmask 130048   ;;  %s77_s10 = smov 80   ;;  %s78_s15 = smov 96   ;;  %s135_s0 = inlined_call_operand.vmem [shape: f32[1,2,256], index: 0, kind: input, shape index: {}]   ;;  %s136_s1 = inlined_call_operand.vmem [shape: f32[32,16], index: 1, kind: output, shape index: {}]  }
   0x1   :  { %v60_v0 = vld [vmem:[%s135_s0 + $0x2] sm:$0x3]  ;;  %v8_v1 = vld [vmem:[%s135_s0] sm:$0x3]  ;;  %s76_s0 = smov 112   ;;  %s79_s16 = smov 64  }
   0x2   :  { %7 = vst [vmem:[#allocation0 + $0x8] sm:$0x3] %v60_v0  ;;  %9 = vst [vmem:[#allocation0] sm:$0x3] %v8_v1  ;;  %s80_s17 = smov 48   ;;  %s81_s18 = smov 32  }
   0x3   :  { %s82_s19 = smov 16  }
   0x9   :  { %v18_v2 = vld.sshfl [vmem:[#allocation0] sm:$0xff pattern:$0x99999180]  }
   0xa   :  { %v10_v3 = vld [vmem:[#allocation0] sm:$0x3]   ;;  %19 = vrot.lane.b32.xlu0 %v18_v2, %s76_s0  ;;  %31 = vrot.lane.b32.xlu1 %v18_v2, %s77_s10  ;;  %v14_v4 = vld [vmem:[#allocation0 + $0x8] sm:$0x3]  }
   0xb   :  { %12 = vst.msk [vmem:[%s136_s1] ss:$16 sm:$0x3] %vm11_vm0, %v10_v3   ;;  %61 = vst.msk [vmem:[%s136_s1 + $0x8] ss:$16 sm:$0x3] %vm11_vm0, %v14_v4  }
   0xe   :  { %25 = vrot.lane.b32.xlu0 %v18_v2, %s78_s15  ;;  %37 = vrot.lane.b32.xlu1 %v18_v2, %s79_s16 }
  0x12   :  { %43 = vrot.lane.b32.xlu0 %v18_v2, %s80_s17  ;;  %49 = vrot.lane.b32.xlu1 %v18_v2, %s81_s18 }
  0x16   :  { %55 = vrot.lane.b32.xlu0 %v18_v2, %s82_s19 }
  0x7c   :  { %v20_v5 = vpop.permute.xlu0 %19   ;;  %v32_v6 = vpop.permute.xlu1 %31  }
  0x7d   :  { %62 = vst.msk [vmem:[%s136_s1 + $0x1] ss:$8 sm:$0xf] %vm11_vm0, %v20_v5   ;;  %64 = vst.msk [vmem:[%s136_s1 + $0x3] ss:$8 sm:$0xf] %vm11_vm0, %v32_v6  }
  0x80   :  { %v26_v7 = vpop.permute.xlu0 %25   ;;  %v38_v8 = vpop.permute.xlu1 %37  }
  0x81   :  { %63 = vst.msk [vmem:[%s136_s1 + $0x2] ss:$8 sm:$0xf] %vm11_vm0, %v26_v7   ;;  %65 = vst.msk [vmem:[%s136_s1 + $0x4] ss:$8 sm:$0xf] %vm11_vm0, %v38_v8  }
  0x84   :  { %v44_v9 = vpop.permute.xlu0 %43   ;;  %v50_v10 = vpop.permute.xlu1 %49  }
  0x85   :  { %66 = vst.msk [vmem:[%s136_s1 + $0x5] ss:$8 sm:$0xf] %vm11_vm0, %v44_v9   ;;  %67 = vst.msk [vmem:[%s136_s1 + $0x6] ss:$8 sm:$0xf] %vm11_vm0, %v50_v10  }
  0x88   :  { %v56_v11 = vpop.permute.xlu0 %55  }
  0x89   :  { %68 = vst.msk [vmem:[%s136_s1 + $0x7] ss:$8 sm:$0xf] %vm11_vm0, %v56_v11  }

// kernel: _lambda_.8
= control target key start
LH: loop header
LB: loop body
LE: loop exit
PB: predicated region body
PF: predicated region fallthrough
CT: control target
= control target key end

     0   :  { %vm14_vm0 = vcmask 122880   ;;  %vm22_vm1 = vcmask 130048   ;;  %v68_v0 = vmov 0.0   ;;  %s126_s0 = inlined_call_operand.vmem [shape: f32[32,16], index: 0, kind: input, shape index: {}]   ;;  %s127_s1 = inlined_call_operand.vmem [shape: f32[1,16], index: 1, kind: output, shape index: {0}]   ;;  %s128_s2 = inlined_call_operand.vmem [shape: f32[1,16], index: 2, kind: output, shape index: {1}]  }
   0x1   :  { %15 = vst.msk [vmem:[%s127_s1] sm:$0x1] %vm14_vm0, %v68_v0  ;;  %v17_v1 = vld [vmem:[%s126_s0] sm:$0xff]  ;;  %v18_v2 = vld [vmem:[%s126_s0 + $0x8] sm:$0xff]  ;;  %v19_v3 = vld [vmem:[%s126_s0 + $0x10] sm:$0xff] }
   0x2   :  { %16 = vst.msk [vmem:[%s128_s2] sm:$0x1] %vm14_vm0, %v68_v0  ;;  %v20_v4 = vld [vmem:[%s126_s0 + $0x18] sm:$0xff]  ;;  %v23_v5 = vsel %vm22_vm1, %v17_v1, 0.0  ;;  %v24_v6 = vsel %vm22_vm1, %v18_v2, 0.0  ;;  %v26_v7 = vsel %vm22_vm1, %v19_v3, 0.0  ;;  %v40_v8 = vmul.f32 %v17_v1, %v17_v1 }
   0x3   :  { %v25_v9 = vadd.f32 %v24_v6, %v23_v5  ;;  %v41_v10 = vmul.f32 %v18_v2, %v18_v2  ;;  %v42_v11 = vmul.f32 %v19_v3, %v19_v3  ;;  %v28_v12 = vsel %vm22_vm1, %v20_v4, 0.0 }
   0x4   :  { %v43_v13 = vmul.f32 %v20_v4, %v20_v4  ;;  %v44_v14 = vsel %vm22_vm1, %v40_v8, 0.0 }
   0x5   :  { %v27_v15 = vadd.f32 %v26_v7, %v25_v9  ;;  %v45_v16 = vsel %vm22_vm1, %v41_v10, 0.0  ;;  %v47_v17 = vsel %vm22_vm1, %v42_v11, 0.0 }
   0x6   :  { %v46_v18 = vadd.f32 %v45_v16, %v44_v14  ;;  %v49_v20 = vsel %vm22_vm1, %v43_v13, 0.0 }
   0x7   :  { %v29_v19 = vadd.f32 %v28_v12, %v27_v15 }
   0x8   :  { %v48_v21 = vadd.f32 %v47_v17, %v46_v18  ;;  %v21_v31 = vld [vmem:[%s127_s1] sm:$0x1] }
   0x9   :  { %v30_v22 = vrot.slane %v29_v19, 4  ;;  %v39_v36 = vld [vmem:[%s128_s2] sm:$0x1] }
   0xa   :  { %v50_v23 = vadd.f32 %v49_v20, %v48_v21 }
   0xb   :  { %v31_v24 = vadd.f32 %v30_v22, %v29_v19 }
   0xc   :  { %v51_v25 = vrot.slane %v50_v23, 4 }
   0xd   :  { %v32_v26 = vrot.slane %v31_v24, 2 }
   0xe   :  { %v52_v27 = vadd.f32 %v51_v25, %v50_v23 }
   0xf   :  { %v33_v28 = vadd.f32 %v32_v26, %v31_v24 }
  0x10   :  { %v53_v29 = vrot.slane %v52_v27, 2 }
  0x11   :  { %v34_v30 = vrot.slane %v33_v28, 1 }
  0x12   :  { %v54_v32 = vadd.f32 %v53_v29, %v52_v27 }
  0x13   :  { %v35_v33 = vadd.f32 %v34_v30, %v33_v28 }
  0x14   :  { %v55_v34 = vrot.slane %v54_v32, 1 }
  0x15   :  { %v36_v35 = vadd.f32 %v35_v33, %v21_v31 }
  0x16   :  { %v56_v37 = vadd.f32 %v55_v34, %v54_v32 }
  0x17   :  { %38 = vst.msk [vmem:[%s127_s1] sm:$0x1] %vm14_vm0, %v36_v35 }
  0x18   :  { %v57_v38 = vadd.f32 %v56_v37, %v39_v36 }
  0x1a   :  { %58 = vst.msk [vmem:[%s128_s2] sm:$0x1] %vm14_vm0, %v57_v38 }

// kernel: _lambda_.9
= control target key start
LH: loop header
LB: loop body
LE: loop exit
PB: predicated region body
PF: predicated region fallthrough
CT: control target
= control target key end

     0   :  { %v39_v8 = vlaneseq  ;;  %vm62_vm0 = vcmask 130048   ;;  %s139_s3 = inlined_call_operand.vmem [shape: f32[1,16], index: 3, kind: input, shape index: {}]   ;;  %s140_s4 = inlined_call_operand.vmem [shape: f32[1,16], index: 4, kind: input, shape index: {}]   ;;  %s141_s1 = inlined_call_operand.vmem [shape: f32[1,16], index: 1, kind: input, shape index: {}]   ;;  %s142_s0 = inlined_call_operand.vmem [shape: f32[32,16], index: 0, kind: input, shape index: {}]   ;;  %s143_s2 = inlined_call_operand.vmem [shape: f32[1,16], index: 2, kind: input, shape index: {}]   ;;  %s144_s5 = inlined_call_operand.vmem [shape: f32[32,16], index: 5, kind: output, shape index: {}]  }
   0x1   :  { %v24_v0 = vld [vmem:[%s139_s3] sm:$0x1]  ;;  %v21_v16 = vld [vmem:[%s142_s0 + $0x8] sm:$0xff]  ;;  %v22_v17 = vld [vmem:[%s142_s0 + $0x10] sm:$0xff] }
   0x2   :  { %v26_v1 = vld [vmem:[%s140_s4] sm:$0x1]  ;;  %v25_v2 = vmul.f32 0.03125, %v24_v0  ;;  %v40_v9 = vshrl.u32 %v39_v8, 7  ;;  %v23_v20 = vld [vmem:[%s142_s0 + $0x18] sm:$0xff] }
   0x3   :  { %v27_v3 = vmul.f32 0.03125, %v26_v1  ;;  %v31_v10 = vld [vmem:[%s141_s1] sm:$0x1] }
   0x4   :  { %v28_v4 = vmul.f32 %v25_v2, %v25_v2  ;;  %v41_v11 = vsub.s32 0, %v40_v9  ;;  %v20_v13 = vld [vmem:[%s142_s0] sm:$0xff] }
   0x5   :  { %v35_v15 = vld [vmem:[%s143_s2] sm:$0x1] }
   0x6   :  { %v29_v5 = vsub.f32 %v27_v3, %v28_v4 }
   0x8   :  { %v30_v6 = vmax.f32 %v29_v5, 0.0 }
   0xa   :  { %v32_v7 = vadd.f32 1e-05, %v30_v6 }
   0xc   :  { %71 = vrsqrt.f32 %v32_v7 }
  0x16   :  { %v72_v12 = vpop.eup %71 }
  0x17   :  { %v34_v14 = vmul.f32 %v72_v12, %v31_v10 }
  0x19   :  { %v36_v18 = vmul.f32 %v34_v14, %v25_v2  ;;  %v42_v19 = vrot.slane %v34_v14, %v41_v11 }
  0x1b   :  { %v37_v21 = vsub.f32 %v35_v15, %v36_v18  ;;  %v44_v22 = vmul.f32 %v42_v19, %v20_v13  ;;  %v45_v23 = vmul.f32 %v42_v19, %v21_v16  ;;  %v46_v24 = vmul.f32 %v42_v19, %v22_v17 }
  0x1c   :  { %v47_v25 = vmul.f32 %v42_v19, %v23_v20 }
  0x1d   :  { %v52_v26 = vrot.slane %v37_v21, %v41_v11 }
  0x1f   :  { %v54_v27 = vadd.f32 %v52_v26, %v44_v22  ;;  %v55_v28 = vadd.f32 %v52_v26, %v45_v23  ;;  %v56_v29 = vadd.f32 %v52_v26, %v46_v24  ;;  %v57_v30 = vadd.f32 %v52_v26, %v47_v25 }
  0x21   :  { %v58_v31 = vmax.f32 %v54_v27, 0.0  ;;  %v59_v32 = vmax.f32 %v55_v28, 0.0  ;;  %v60_v33 = vmax.f32 %v56_v29, 0.0  ;;  %v61_v34 = vmax.f32 %v57_v30, 0.0 }
  0x23   :  { %63 = vst.msk [vmem:[%s144_s5] sm:$0xff] %vm62_vm0, %v58_v31  ;;  %64 = vst.msk [vmem:[%s144_s5 + $0x8] sm:$0xff] %vm62_vm0, %v59_v32 }
  0x24   :  { %65 = vst.msk [vmem:[%s144_s5 + $0x10] sm:$0xff] %vm62_vm0, %v60_v33  ;;  %66 = vst.msk [vmem:[%s144_s5 + $0x18] sm:$0xff] %vm62_vm0, %v61_v34 }

// kernel: _lambda_.7
= control target key start
LH: loop header
LB: loop body
LE: loop exit
PB: predicated region body
PF: predicated region fallthrough
CT: control target
= control target key end

     0   :  { %v214_v1 = vmov 0   ;;  %s287_s1 = inlined_call_operand.vmem [shape: bf16[1,128,256], index: 1, kind: input, shape index: {}]   ;;  %s288_s0 = inlined_call_operand.vmem [shape: bf16[1,8,128], index: 0, kind: input, shape index: {}]   ;;  %s289_s2 = inlined_call_operand.vmem [shape: f32[1,8,256], index: 2, kind: output, shape index: {}]  }
   0x1   :  { %v190_v0 = vld [vmem:[%s287_s1 + $0x4] ss:$8 sps:$4 sm:$0xff]   ;;  %149 = vmatprep.mubr.bf16.mxu0 %v214_v1  ;;  %v192_v2 = vld [vmem:[%s287_s1] ss:$8 sps:$4 sm:$0xff]   ;;  %v193_v3 = vld [vmem:[%s287_s1 + $0x14] ss:$8 sps:$4 sm:$0xff]  }
   0x2   :  { %117 = vmatprep.subr.bf16.mxu0 %v190_v0  ;;  %v195_v4 = vld [vmem:[%s287_s1 + $0x10] ss:$8 sps:$4 sm:$0xff]   ;;  %v196_v5 = vld [vmem:[%s287_s1 + $0x24] ss:$8 sps:$4 sm:$0xff]   ;;  %v198_v6 = vld [vmem:[%s287_s1 + $0x20] ss:$8 sps:$4 sm:$0xff]  }
   0x3   :  { %118 = vmatpush1.bf16.msra.mxu0 %v192_v2  ;;  %v199_v7 = vld [vmem:[%s287_s1 + $0x34] ss:$8 sps:$4 sm:$0xff]   ;;  %v201_v8 = vld [vmem:[%s287_s1 + $0x30] ss:$8 sps:$4 sm:$0xff]   ;;  %v202_v9 = vld [vmem:[%s287_s1 + $0x44] ss:$8 sps:$4 sm:$0xff]  }
   0x4   :  { %119 = vmatprep.subr.bf16.mxu0 %v193_v3  ;;  %v204_v10 = vld [vmem:[%s287_s1 + $0x40] ss:$8 sps:$4 sm:$0xff]   ;;  %v205_v11 = vld [vmem:[%s287_s1 + $0x54] ss:$8 sps:$4 sm:$0xff]   ;;  %v207_v12 = vld [vmem:[%s287_s1 + $0x50] ss:$8 sps:$4 sm:$0xff]  }
   0x5   :  { %v208_v13 = vld [vmem:[%s287_s1 + $0x64] ss:$8 sps:$4 sm:$0xff]   ;;  %v210_v14 = vld [vmem:[%s287_s1 + $0x60] ss:$8 sps:$4 sm:$0xff]   ;;  %v211_v15 = vld [vmem:[%s287_s1 + $0x74] ss:$8 sps:$4 sm:$0xff]  }
   0x6   :  { %v213_v16 = vld [vmem:[%s287_s1 + $0x70] ss:$8 sps:$4 sm:$0xff]   ;;  %v20_v17 = vld [vmem:[%s288_s0] sm:$0xf] }
   0x7   :  { %120 = vmatpush1.bf16.msra.mxu0 %v195_v4 }
   0x8   :  { %121 = vmatprep.subr.bf16.mxu0 %v196_v5 }
   0xb   :  { %122 = vmatpush1.bf16.msra.mxu0 %v198_v6 }
   0xc   :  { %123 = vmatprep.subr.bf16.mxu0 %v199_v7 }
   0xf   :  { %124 = vmatpush1.bf16.msra.mxu0 %v201_v8 }
  0x10   :  { %125 = vmatprep.subr.bf16.mxu0 %v202_v9 }
  0x13   :  { %126 = vmatpush1.bf16.msra.mxu0 %v204_v10 }
  0x14   :  { %127 = vmatprep.subr.bf16.mxu0 %v205_v11 }
  0x17   :  { %128 = vmatpush1.bf16.msra.mxu0 %v207_v12 }
  0x18   :  { %129 = vmatprep.subr.bf16.mxu0 %v208_v13 }
  0x1b   :  { %130 = vmatpush1.bf16.msra.mxu0 %v210_v14 }
  0x1c   :  { %131 = vmatprep.subr.bf16.mxu0 %v211_v15 }
  0x1f   :  { %132 = vmatpush1.bf16.msra.mxu0 %v213_v16 }
  0x22   :  { %150 = vmatmul.mubr.bf16.vlgmr.msra.gmra.mrb[0].mxu0 %v20_v17 }
  0xf5   :  { %v151_v18 = vpop.f32.mrb[0].mxu0 }
  0xf6   :  { %167 = vst [vmem:[%s289_s2] sm:$0xff] %v151_v18  ;;  %v153_v19 = vpop.f32.mrb[1].mxu0 }
  0xf7   :  { %168 = vst [vmem:[%s289_s2 + $0x8] sm:$0xff] %v153_v19  ;;  %v155_v20 = vpop.f32.mrb[2].mxu0 }
  0xf8   :  { %v156_v21 = vpop.f32.mrb[3].mxu0 }

// kernel: _lambda_.10
= control target key start
LH: loop header
LB: loop body
LE: loop exit
PB: predicated region body
PF: predicated region fallthrough
CT: control target
= control target key end

     0   :  { %s680_s9 = smov 0   ;;  %s682_s10 = smov 0   ;;  %s721_s0 = inlined_call_operand.vmem [shape: bf16[4,32,128], index: 0, kind: input, shape index: {}]   ;;  %s722_s1 = inlined_call_operand.vmem [shape: bf16[4,128,128], index: 1, kind: input, shape index: {}]   ;;  %s723_s2 = inlined_call_operand.vmem [shape: f32[4,32,128], index: 2, kind: output, shape index: {}]  }
   0x1   :  { %s684_s11 = smov 0  }
   0x2 LB: > { %s38_s12 = sadd.s32 1, %s659_s10  ;;  %p555_p0 = scmp.ge.s32.totalorder %s663_s11, 1  ;;  %s663_s11 = sphi %s684_s11, %s12_s11   ;;  %s659_s10 = sphi %s682_s10, %s725_s10   ;;  %s655_s9 = sphi %s680_s9, %s724_s9  }
   0x3   : > { %p40_p1 = scmp.ge.s32.totalorder %s38_s12, 4  ;;  %p176_p2 = scmp.lt.s32.totalorder %s663_s11, 5 }
   0x5   : > { %s727_s12 = smov (%p40_p1, %s38_s12), 0  ;;  %p177_p3 = pnand %p555_p0, %p176_p2 }
   0x6   : > { %p225_p4 = scmp.lt.s32.totalorder (!%p177_p3), %s655_s9, 3 }
   0x7   : > { %180 = sbr.rel (%p177_p3) target bundleno = 266 (0x10a), region = 28 }
   0xe   : > { %s729_s9 = smov (!%p225_p4, %s655_s9), 3 }
   0xf   : > { %s575_s13 = sshll.u32 %s729_s9, 6  ;;  %s574_s17 = sshll.u32 %s729_s9, 4 }
  0x10   : > { %s248_s16 = scalar_lea.vmem %s722_s1, %s575_s13  ;;  %s235_s20 = scalar_lea.vmem %s721_s0, %s574_s17 }
  0x11   : > { %v631_v0 = vld [vmem:[%s248_s16] sm:$0xff]   ;;  %v632_v1 = vld [vmem:[%s248_s16 + $0x8] sm:$0xff]   ;;  %v633_v2 = vld [vmem:[%s248_s16 + $0x10] sm:$0xff]   ;;  %s576_s21 = sshll.u32 %s729_s9, 5 }
  0x12   : > { %587 = vmatprep.subr.bf16.mxu0 %v631_v0  ;;  %v634_v3 = vld [vmem:[%s248_s16 + $0x18] sm:$0xff]   ;;  %v639_v4 = vld [vmem:[%s235_s20] sm:$0xff]   ;;  %v636_v6 = vld [vmem:[%s248_s16 + $0x28] sm:$0xff]   ;;  %s261_s24 = scalar_lea.vmem %s723_s2, %s576_s21 }
  0x13   : > { %588 = vmatpush3.bf16.msra.mxu0 %v631_v0  ;;  %603 = vmatprep.mubr.bf16.mxu0 %v639_v4  ;;  %v635_v5 = vld [vmem:[%s248_s16 + $0x20] sm:$0xff]   ;;  %v637_v7 = vld [vmem:[%s248_s16 + $0x30] sm:$0xff]   ;;  %v638_v8 = vld [vmem:[%s248_s16 + $0x38] sm:$0xff]  }
  0x14   : > { %589 = vmatprep.subr.bf16.mxu0 %v632_v1  ;;  %v640_v9 = vld [vmem:[%s235_s20 + $0x8] sm:$0xff]  }
  0x17   : > { %590 = vmatpush3.bf16.msra.mxu0 %v632_v1 }
  0x18   : > { %591 = vmatprep.subr.bf16.mxu0 %v633_v2 }
  0x1b   : > { %592 = vmatpush3.bf16.msra.mxu0 %v633_v2 }
  0x1c   : > { %593 = vmatprep.subr.bf16.mxu0 %v634_v3 }
  0x1f   : > { %594 = vmatpush3.bf16.msra.mxu0 %v634_v3 }
  0x20   : > { %595 = vmatprep.subr.bf16.mxu0 %v635_v5 }
  0x23   : > { %596 = vmatpush3.bf16.msra.mxu0 %v635_v5 }
  0x24   : > { %597 = vmatprep.subr.bf16.mxu0 %v636_v6 }
  0x27   : > { %598 = vmatpush3.bf16.msra.mxu0 %v636_v6 }
  0x28   : > { %599 = vmatprep.subr.bf16.mxu0 %v637_v7 }
  0x2b   : > { %600 = vmatpush3.bf16.msra.mxu0 %v637_v7 }
  0x2c   : > { %601 = vmatprep.subr.bf16.mxu0 %v638_v8 }
  0x2f   : > { %602 = vmatpush3.bf16.msra.mxu0 %v638_v8 }
  0x32   : > { %604 = vmatmul.mubr.bf16.vlgmr.msra.gmra.mrb[0].mxu0 %v640_v9 }
 0x105   : > { %v605_v10 = vpop.f32.mrb[0].mxu0 }
 0x106   : > { %422 = vst [vmem:[%s261_s24 + $0x10] sm:$0xff] %v605_v10  ;;  %v390_v11 = vpop.f32.mrb[1].mxu0 }
 0x107   : > { %420 = vst [vmem:[%s261_s24] sm:$0xff] %v390_v11  ;;  %v606_v12 = vpop.f32.mrb[2].mxu0 }
 0x108   : > { %423 = vst [vmem:[%s261_s24 + $0x18] sm:$0xff] %v606_v12  ;;  %v393_v13 = vpop.f32.mrb[3].mxu0 }
 0x109   : > { %421 = vst [vmem:[%s261_s24 + $0x8] sm:$0xff] %v393_v13 }
 0x10a PF: > { %s12_s11 = sadd.s32 1, %s663_s11   ;;  %s724_s9 = smov %s659_s10 }
 0x10b   : > { %p9_p5 = scmp.ge.s32.totalorder %s12_s11, 6   ;;  %s725_s10 = smov %s727_s12 }
 0x10d   :  { %11 = sbr.rel (!%p9_p5) target bundleno = 2 (0x2), region = 69 }

// kernel: _lambda_.11
= control target key start
LH: loop header
LB: loop body
LE: loop exit
PB: predicated region body
PF: predicated region fallthrough
CT: control target
= control target key end

     0   :  { %vm14_vm0 = vcmask 57344   ;;  %vm34_vm1 = vcmask 64512   ;;  %v140_v0 = vmov 0.0   ;;  %s258_s0 = inlined_call_operand.vmem [shape: f32[128,8], index: 0, kind: input, shape index: {}]   ;;  %s259_s1 = inlined_call_operand.vmem [shape: f32[1,8], index: 1, kind: output, shape index: {0}]   ;;  %s260_s2 = inlined_call_operand.vmem [shape: f32[1,8], index: 2, kind: output, shape index: {1}]  }
   0x1   :  { %15 = vst.msk [vmem:[%s259_s1] sm:$0x1] %vm14_vm0, %v140_v0  ;;  %v17_v1 = vld [vmem:[%s258_s0] sm:$0xff]  ;;  %v18_v2 = vld [vmem:[%s258_s0 + $0x8] sm:$0xff]  ;;  %v19_v3 = vld [vmem:[%s258_s0 + $0x10] sm:$0xff] }
   0x2   :  { %16 = vst.msk [vmem:[%s260_s2] sm:$0x1] %vm14_vm0, %v140_v0  ;;  %v35_v4 = vsel %vm34_vm1, %v17_v1, 0.0  ;;  %v36_v5 = vsel %vm34_vm1, %v18_v2, 0.0  ;;  %v38_v6 = vsel %vm34_vm1, %v19_v3, 0.0  ;;  %v20_v7 = vld [vmem:[%s258_s0 + $0x18] sm:$0xff]  ;;  %v76_v15 = vmul.f32 %v17_v1, %v17_v1 }
   0x3   :  { %v37_v8 = vadd.f32 %v36_v5, %v35_v4  ;;  %v40_v9 = vsel %vm34_vm1, %v20_v7, 0.0  ;;  %v21_v10 = vld [vmem:[%s258_s0 + $0x20] sm:$0xff]  ;;  %v22_v13 = vld [vmem:[%s258_s0 + $0x28] sm:$0xff]  ;;  %v77_v16 = vmul.f32 %v18_v2, %v18_v2  ;;  %v78_v17 = vmul.f32 %v19_v3, %v19_v3  ;;  %v23_v19 = vld [vmem:[%s258_s0 + $0x30] sm:$0xff] }
   0x4   :  { %v42_v12 = vsel %vm34_vm1, %v21_v10, 0.0  ;;  %v44_v18 = vsel %vm34_vm1, %v22_v13, 0.0  ;;  %v79_v21 = vmul.f32 %v20_v7, %v20_v7  ;;  %v46_v22 = vsel %vm34_vm1, %v23_v19, 0.0  ;;  %v24_v24 = vld [vmem:[%s258_s0 + $0x38] sm:$0xff]  ;;  %v25_v31 = vld [vmem:[%s258_s0 + $0x40] sm:$0xff]  ;;  %v26_v37 = vld [vmem:[%s258_s0 + $0x48] sm:$0xff] }
   0x5   :  { %v39_v11 = vadd.f32 %v38_v6, %v37_v8  ;;  %v80_v23 = vmul.f32 %v21_v10, %v21_v10  ;;  %v92_v26 = vsel %vm34_vm1, %v76_v15, 0.0  ;;  %v93_v27 = vsel %vm34_vm1, %v77_v16, 0.0  ;;  %v27_v43 = vld [vmem:[%s258_s0 + $0x50] sm:$0xff]  ;;  %v28_v49 = vld [vmem:[%s258_s0 + $0x58] sm:$0xff]  ;;  %v29_v55 = vld [vmem:[%s258_s0 + $0x60] sm:$0xff] }
   0x6   :  { %v95_v28 = vsel %vm34_vm1, %v78_v17, 0.0  ;;  %v48_v29 = vsel %vm34_vm1, %v24_v24, 0.0  ;;  %v94_v30 = vadd.f32 %v93_v27, %v92_v26  ;;  %v81_v33 = vmul.f32 %v22_v13, %v22_v13  ;;  %v30_v61 = vld [vmem:[%s258_s0 + $0x68] sm:$0xff]  ;;  %v31_v3 = vld [vmem:[%s258_s0 + $0x70] sm:$0xff] }
   0x7   :  { %v41_v14 = vadd.f32 %v40_v9, %v39_v11  ;;  %v97_v34 = vsel %vm34_vm1, %v79_v21, 0.0  ;;  %v50_v35 = vsel %vm34_vm1, %v25_v31, 0.0  ;;  %v82_v39 = vmul.f32 %v23_v19, %v23_v19  ;;  %v32_v9 = vld [vmem:[%s258_s0 + $0x78] sm:$0xff] }
   0x8   :  { %v96_v36 = vadd.f32 %v95_v28, %v94_v30  ;;  %v99_v40 = vsel %vm34_vm1, %v80_v23, 0.0  ;;  %v52_v41 = vsel %vm34_vm1, %v26_v37, 0.0  ;;  %v83_v45 = vmul.f32 %v24_v24, %v24_v24 }
   0x9   :  { %v43_v20 = vadd.f32 %v42_v12, %v41_v14  ;;  %v101_v46 = vsel %vm34_vm1, %v81_v33, 0.0  ;;  %v54_v47 = vsel %vm34_vm1, %v27_v43, 0.0  ;;  %v84_v51 = vmul.f32 %v25_v31, %v25_v31 }
   0xa   :  { %v98_v42 = vadd.f32 %v97_v34, %v96_v36  ;;  %v103_v52 = vsel %vm34_vm1, %v82_v39, 0.0  ;;  %v56_v53 = vsel %vm34_vm1, %v28_v49, 0.0  ;;  %v85_v57 = vmul.f32 %v26_v37, %v26_v37  ;;  %v33_v36 = vld [vmem:[%s259_s1] sm:$0x1] }
   0xb   :  { %v45_v25 = vadd.f32 %v44_v18, %v43_v20  ;;  %v105_v58 = vsel %vm34_vm1, %v83_v45, 0.0  ;;  %v58_v59 = vsel %vm34_vm1, %v29_v55, 0.0  ;;  %v86_v63 = vmul.f32 %v27_v43, %v27_v43 }
   0xc   :  { %v100_v48 = vadd.f32 %v99_v40, %v98_v42  ;;  %v107_v0 = vsel %vm34_vm1, %v84_v51, 0.0  ;;  %v60_v1 = vsel %vm34_vm1, %v30_v61, 0.0  ;;  %v87_v5 = vmul.f32 %v28_v49, %v28_v49 }
   0xd   :  { %v47_v32 = vadd.f32 %v46_v22, %v45_v25  ;;  %v109_v6 = vsel %vm34_vm1, %v85_v57, 0.0  ;;  %v62_v7 = vsel %vm34_vm1, %v31_v3, 0.0  ;;  %v88_v11 = vmul.f32 %v29_v55, %v29_v55 }
   0xe   :  { %v102_v54 = vadd.f32 %v101_v46, %v100_v48  ;;  %v111_v12 = vsel %vm34_vm1, %v86_v63, 0.0  ;;  %v64_v13 = vsel %vm34_vm1, %v32_v9, 0.0  ;;  %v89_v16 = vmul.f32 %v30_v61, %v30_v61 }
   0xf   :  { %v49_v38 = vadd.f32 %v48_v29, %v47_v32  ;;  %v113_v17 = vsel %vm34_vm1, %v87_v5, 0.0  ;;  %v90_v20 = vmul.f32 %v31_v3, %v31_v3  ;;  %v115_v21 = vsel %vm34_vm1, %v88_v11, 0.0 }
  0x10   :  { %v104_v60 = vadd.f32 %v103_v52, %v102_v54  ;;  %v91_v24 = vmul.f32 %v32_v9, %v32_v9  ;;  %v117_v25 = vsel %vm34_vm1, %v89_v16, 0.0 }
  0x11   :  { %v51_v44 = vadd.f32 %v50_v35, %v49_v38  ;;  %v119_v28 = vsel %vm34_vm1, %v90_v20, 0.0 }
  0x12   :  { %v106_v2 = vadd.f32 %v105_v58, %v104_v60  ;;  %v121_v31 = vsel %vm34_vm1, %v91_v24, 0.0 }
  0x13   :  { %v53_v50 = vadd.f32 %v52_v41, %v51_v44  ;;  %v75_v44 = vld [vmem:[%s260_s2] sm:$0x1] }
  0x14   :  { %v108_v8 = vadd.f32 %v107_v0, %v106_v2 }
  0x15   :  { %v55_v56 = vadd.f32 %v54_v47, %v53_v50 }
  0x16   :  { %v110_v14 = vadd.f32 %v109_v6, %v108_v8 }
  0x17   :  { %v57_v62 = vadd.f32 %v56_v53, %v55_v56 }
  0x18   :  { %v112_v18 = vadd.f32 %v111_v12, %v110_v14 }
  0x19   :  { %v59_v4 = vadd.f32 %v58_v59, %v57_v62 }
  0x1a   :  { %v114_v22 = vadd.f32 %v113_v17, %v112_v18 }
  0x1b   :  { %v61_v10 = vadd.f32 %v60_v1, %v59_v4 }
  0x1c   :  { %v116_v26 = vadd.f32 %v115_v21, %v114_v22 }
  0x1d   :  { %v63_v15 = vadd.f32 %v62_v7, %v61_v10 }
  0x1e   :  { %v118_v29 = vadd.f32 %v117_v25, %v116_v26 }
  0x1f   :  { %v65_v19 = vadd.f32 %v64_v13, %v63_v15 }
  0x20   :  { %v120_v32 = vadd.f32 %v119_v28, %v118_v29 }
  0x21   :  { %v66_v23 = vrot.slane %v65_v19, 4 }
  0x22   :  { %v122_v34 = vadd.f32 %v121_v31, %v120_v32 }
  0x23   :  { %v67_v27 = vadd.f32 %v66_v23, %v65_v19 }
  0x24   :  { %v123_v37 = vrot.slane %v122_v34, 4 }
  0x25   :  { %v68_v30 = vrot.slane %v67_v27, 2 }
  0x26   :  { %v124_v39 = vadd.f32 %v123_v37, %v122_v34 }
  0x27   :  { %v69_v33 = vadd.f32 %v68_v30, %v67_v27 }
  0x28   :  { %v125_v41 = vrot.slane %v124_v39, 2 }
  0x29   :  { %v70_v35 = vrot.slane %v69_v33, 1 }
  0x2a   :  { %v126_v42 = vadd.f32 %v125_v41, %v124_v39 }
  0x2b   :  { %v71_v38 = vadd.f32 %v70_v35, %v69_v33 }
  0x2c   :  { %v127_v43 = vrot.slane %v126_v42, 1 }
  0x2d   :  { %v72_v40 = vadd.f32 %v71_v38, %v33_v36 }
  0x2e   :  { %v128_v45 = vadd.f32 %v127_v43, %v126_v42 }
  0x2f   :  { %74 = vst.msk [vmem:[%s259_s1] sm:$0x1] %vm14_vm0, %v72_v40 }
  0x30   :  { %v129_v46 = vadd.f32 %v128_v45, %v75_v44 }
  0x32   :  { %130 = vst.msk [vmem:[%s260_s2] sm:$0x1] %vm14_vm0, %v129_v46 }

// kernel: _lambda_.12
= control target key start
LH: loop header
LB: loop body
LE: loop exit
PB: predicated region body
PF: predicated region fallthrough
CT: control target
= control target key end

     0   :  { %v51_v8 = vlaneseq  ;;  %vm110_vm0 = vcmask 64512   ;;  %s287_s3 = inlined_call_operand.vmem [shape: f32[1,8], index: 3, kind: input, shape index: {}]   ;;  %s288_s4 = inlined_call_operand.vmem [shape: f32[1,8], index: 4, kind: input, shape index: {}]   ;;  %s289_s1 = inlined_call_operand.vmem [shape: f32[1,8], index: 1, kind: input, shape index: {}]   ;;  %s290_s0 = inlined_call_operand.vmem [shape: f32[128,8], index: 0, kind: input, shape index: {}]   ;;  %s291_s2 = inlined_call_operand.vmem [shape: f32[1,8], index: 2, kind: input, shape index: {}]   ;;  %s292_s5 = inlined_call_operand.vmem [shape: f32[128,8], index: 5, kind: output, shape index: {}]  }
   0x1   :  { %v36_v0 = vld [vmem:[%s287_s3] sm:$0x1]  ;;  %v21_v16 = vld [vmem:[%s290_s0 + $0x8] sm:$0xff]  ;;  %v22_v17 = vld [vmem:[%s290_s0 + $0x10] sm:$0xff] }
   0x2   :  { %v38_v1 = vld [vmem:[%s288_s4] sm:$0x1]  ;;  %v37_v2 = vmul.f32 0.0078125, %v36_v0  ;;  %v52_v9 = vshrl.u32 %v51_v8, 7  ;;  %v23_v18 = vld [vmem:[%s290_s0 + $0x18] sm:$0xff]  ;;  %v25_v22 = vld [vmem:[%s290_s0 + $0x28] sm:$0xff] }
   0x3   :  { %v39_v3 = vmul.f32 0.0078125, %v38_v1  ;;  %v43_v10 = vld [vmem:[%s289_s1] sm:$0x1]  ;;  %v26_v23 = vld [vmem:[%s290_s0 + $0x30] sm:$0xff]  ;;  %v27_v24 = vld [vmem:[%s290_s0 + $0x38] sm:$0xff] }
   0x4   :  { %v40_v4 = vmul.f32 %v37_v2, %v37_v2  ;;  %v53_v11 = vsub.s32 0, %v52_v9  ;;  %v20_v13 = vld [vmem:[%s290_s0] sm:$0xff]  ;;  %v29_v26 = vld [vmem:[%s290_s0 + $0x48] sm:$0xff]  ;;  %v30_v27 = vld [vmem:[%s290_s0 + $0x50] sm:$0xff] }
   0x5   :  { %v47_v15 = vld [vmem:[%s291_s2] sm:$0x1]  ;;  %v31_v32 = vld [vmem:[%s290_s0 + $0x58] sm:$0xff]  ;;  %v33_v34 = vld [vmem:[%s290_s0 + $0x68] sm:$0xff] }
   0x6   :  { %v41_v5 = vsub.f32 %v39_v3, %v40_v4  ;;  %v24_v19 = vld [vmem:[%s290_s0 + $0x20] sm:$0xff]  ;;  %v34_v59 = vld [vmem:[%s290_s0 + $0x70] sm:$0xff]  ;;  %v35_v60 = vld [vmem:[%s290_s0 + $0x78] sm:$0xff] }
   0x7   :  { %v28_v25 = vld [vmem:[%s290_s0 + $0x40] sm:$0xff] }
   0x8   :  { %v42_v6 = vmax.f32 %v41_v5, 0.0  ;;  %v32_v33 = vld [vmem:[%s290_s0 + $0x60] sm:$0xff] }
   0xa   :  { %v44_v7 = vadd.f32 1e-05, %v42_v6 }
   0xc   :  { %131 = vrsqrt.f32 %v44_v7 }
  0x16   :  { %v132_v12 = vpop.eup %131 }
  0x17   :  { %v46_v14 = vmul.f32 %v132_v12, %v43_v10 }
  0x19   :  { %v48_v20 = vmul.f32 %v46_v14, %v37_v2  ;;  %v54_v21 = vrot.slane %v46_v14, %v53_v11 }
  0x1b   :  { %v49_v28 = vsub.f32 %v47_v15, %v48_v20  ;;  %v56_v29 = vmul.f32 %v54_v21, %v20_v13  ;;  %v57_v30 = vmul.f32 %v54_v21, %v21_v16  ;;  %v58_v31 = vmul.f32 %v54_v21, %v22_v17 }
  0x1c   :  { %v59_v35 = vmul.f32 %v54_v21, %v23_v18  ;;  %v60_v36 = vmul.f32 %v54_v21, %v24_v19  ;;  %v61_v37 = vmul.f32 %v54_v21, %v25_v22  ;;  %v62_v38 = vmul.f32 %v54_v21, %v26_v23 }
  0x1d   :  { %v76_v39 = vrot.slane %v49_v28, %v53_v11  ;;  %v63_v40 = vmul.f32 %v54_v21, %v27_v24  ;;  %v64_v41 = vmul.f32 %v54_v21, %v28_v25  ;;  %v65_v42 = vmul.f32 %v54_v21, %v29_v26 }
  0x1e   :  { %v66_v43 = vmul.f32 %v54_v21, %v30_v27  ;;  %v67_v44 = vmul.f32 %v54_v21, %v31_v32  ;;  %v68_v45 = vmul.f32 %v54_v21, %v32_v33  ;;  %v69_v46 = vmul.f32 %v54_v21, %v33_v34 }
  0x1f   :  { %v78_v47 = vadd.f32 %v76_v39, %v56_v29  ;;  %v79_v48 = vadd.f32 %v76_v39, %v57_v30  ;;  %v80_v49 = vadd.f32 %v76_v39, %v58_v31  ;;  %v81_v50 = vadd.f32 %v76_v39, %v59_v35 }
  0x20   :  { %v82_v51 = vadd.f32 %v76_v39, %v60_v36  ;;  %v83_v52 = vadd.f32 %v76_v39, %v61_v37  ;;  %v84_v53 = vadd.f32 %v76_v39, %v62_v38  ;;  %v85_v54 = vadd.f32 %v76_v39, %v63_v40 }
  0x21   :  { %v94_v55 = vmax.f32 %v78_v47, 0.0  ;;  %v95_v56 = vmax.f32 %v79_v48, 0.0  ;;  %v96_v57 = vmax.f32 %v80_v49, 0.0  ;;  %v97_v58 = vmax.f32 %v81_v50, 0.0 }
  0x22   :  { %v98_v61 = vmax.f32 %v82_v51, 0.0  ;;  %v99_v62 = vmax.f32 %v83_v52, 0.0  ;;  %v100_v63 = vmax.f32 %v84_v53, 0.0  ;;  %v101_v0 = vmax.f32 %v85_v54, 0.0 }
  0x23   :  { %111 = vst.msk [vmem:[%s292_s5] sm:$0xff] %vm110_vm0, %v94_v55  ;;  %112 = vst.msk [vmem:[%s292_s5 + $0x8] sm:$0xff] %vm110_vm0, %v95_v56  ;;  %v86_v1 = vadd.f32 %v76_v39, %v64_v41  ;;  %v87_v2 = vadd.f32 %v76_v39, %v65_v42  ;;  %v88_v3 = vadd.f32 %v76_v39, %v66_v43 }
  0x24   :  { %113 = vst.msk [vmem:[%s292_s5 + $0x10] sm:$0xff] %vm110_vm0, %v96_v57  ;;  %114 = vst.msk [vmem:[%s292_s5 + $0x18] sm:$0xff] %vm110_vm0, %v97_v58  ;;  %v89_v4 = vadd.f32 %v76_v39, %v67_v44  ;;  %v90_v5 = vadd.f32 %v76_v39, %v68_v45  ;;  %v91_v6 = vadd.f32 %v76_v39, %v69_v46 }
  0x25   :  { %115 = vst.msk [vmem:[%s292_s5 + $0x20] sm:$0xff] %vm110_vm0, %v98_v61  ;;  %116 = vst.msk [vmem:[%s292_s5 + $0x28] sm:$0xff] %vm110_vm0, %v99_v62  ;;  %v70_v7 = vmul.f32 %v54_v21, %v34_v59  ;;  %v71_v8 = vmul.f32 %v54_v21, %v35_v60  ;;  %v102_v9 = vmax.f32 %v86_v1, 0.0  ;;  %v103_v10 = vmax.f32 %v87_v2, 0.0 }
  0x26   :  { %117 = vst.msk [vmem:[%s292_s5 + $0x30] sm:$0xff] %vm110_vm0, %v100_v63  ;;  %118 = vst.msk [vmem:[%s292_s5 + $0x38] sm:$0xff] %vm110_vm0, %v101_v0  ;;  %v104_v11 = vmax.f32 %v88_v3, 0.0  ;;  %v105_v12 = vmax.f32 %v89_v4, 0.0  ;;  %v106_v13 = vmax.f32 %v90_v5, 0.0  ;;  %v107_v14 = vmax.f32 %v91_v6, 0.0 }
  0x27   :  { %v92_v15 = vadd.f32 %v76_v39, %v70_v7  ;;  %v93_v16 = vadd.f32 %v76_v39, %v71_v8  ;;  %119 = vst.msk [vmem:[%s292_s5 + $0x40] sm:$0xff] %vm110_vm0, %v102_v9  ;;  %120 = vst.msk [vmem:[%s292_s5 + $0x48] sm:$0xff] %vm110_vm0, %v103_v10 }
  0x28   :  { %121 = vst.msk [vmem:[%s292_s5 + $0x50] sm:$0xff] %vm110_vm0, %v104_v11  ;;  %122 = vst.msk [vmem:[%s292_s5 + $0x58] sm:$0xff] %vm110_vm0, %v105_v12 }
  0x29   :  { %123 = vst.msk [vmem:[%s292_s5 + $0x60] sm:$0xff] %vm110_vm0, %v106_v13  ;;  %124 = vst.msk [vmem:[%s292_s5 + $0x68] sm:$0xff] %vm110_vm0, %v107_v14  ;;  %v108_v17 = vmax.f32 %v92_v15, 0.0  ;;  %v109_v18 = vmax.f32 %v93_v16, 0.0 }
  0x2b   :  { %125 = vst.msk [vmem:[%s292_s5 + $0x70] sm:$0xff] %vm110_vm0, %v108_v17  ;;  %126 = vst.msk [vmem:[%s292_s5 + $0x78] sm:$0xff] %vm110_vm0, %v109_v18 }

// kernel: _lambda_.13
= control target key start
LH: loop header
LB: loop body
LE: loop exit
PB: predicated region body
PF: predicated region fallthrough
CT: control target
= control target key end

     0   :  { %s942_s9 = smov 0   ;;  %s944_s10 = smov 0   ;;  %s1020_s0 = inlined_call_operand.vmem [shape: bf16[4,128,128], index: 0, kind: input, shape index: {}]   ;;  %s1021_s1 = inlined_call_operand.vmem [shape: bf16[4,128,128], index: 1, kind: input, shape index: {}]   ;;  %s1022_s2 = inlined_call_operand.vmem [shape: f32[4,128,128], index: 2, kind: output, shape index: {}]  }
   0x1   :  { %s946_s11 = smov 0  }
   0x2 LB: > { %s38_s12 = sadd.s32 1, %s921_s10  ;;  %p739_p0 = scmp.ge.s32.totalorder %s925_s11, 1  ;;  %s925_s11 = sphi %s946_s11, %s12_s11   ;;  %s921_s10 = sphi %s944_s10, %s1024_s10   ;;  %s917_s9 = sphi %s942_s9, %s1023_s9  }
   0x3   : > { %p40_p1 = scmp.ge.s32.totalorder %s38_s12, 4  ;;  %p176_p2 = scmp.lt.s32.totalorder %s925_s11, 5 }
   0x5   : > { %s1026_s12 = smov (%p40_p1, %s38_s12), 0  ;;  %p177_p3 = pnand %p739_p0, %p176_p2 }
   0x6   : > { %p225_p4 = scmp.lt.s32.totalorder (!%p177_p3), %s917_s9, 3 }
   0x7   : > { %180 = sbr.rel (%p177_p3) target bundleno = 289 (0x121), region = 28 }
   0xe   : > { %s1028_s9 = smov (!%p225_p4, %s917_s9), 3 }
   0xf   : > { %s764_s13 = sshll.u32 %s1028_s9, 6  ;;  %s766_s20 = sshll.u32 %s1028_s9, 7 }
  0x10   : > { %s966_s16 = scalar_lea.vmem %s1021_s1, %s764_s13  ;;  %s974_s19 = scalar_lea.vmem %s1020_s0, %s764_s13 }
  0x11   : > { %v855_v0 = vld [vmem:[%s966_s16] sm:$0xff]   ;;  %v856_v1 = vld [vmem:[%s966_s16 + $0x8] sm:$0xff]   ;;  %v857_v2 = vld [vmem:[%s966_s16 + $0x10] sm:$0xff]   ;;  %s993_s23 = scalar_lea.vmem %s1022_s2, %s766_s20 }
  0x12   : > { %783 = vmatprep.subr.bf16.mxu0 %v855_v0  ;;  %815 = vmatprep.subr.bf16.mxu1 %v855_v0  ;;  %v858_v3 = vld [vmem:[%s966_s16 + $0x18] sm:$0xff]   ;;  %v863_v4 = vld [vmem:[%s974_s19] sm:$0xff]   ;;  %v860_v7 = vld [vmem:[%s966_s16 + $0x28] sm:$0xff]  }
  0x13   : > { %784 = vmatpush3.bf16.msra.mxu0 %v855_v0  ;;  %823 = vmatpush3.bf16.msra.mxu1 %v855_v0  ;;  %v864_v5 = vld [vmem:[%s974_s19 + $0x20] sm:$0xff]   ;;  %v861_v8 = vld [vmem:[%s966_s16 + $0x30] sm:$0xff]   ;;  %v862_v9 = vld [vmem:[%s966_s16 + $0x38] sm:$0xff]  }
  0x14   : > { %785 = vmatprep.subr.bf16.mxu0 %v856_v1  ;;  %816 = vmatprep.subr.bf16.mxu1 %v856_v1  ;;  %v859_v6 = vld [vmem:[%s966_s16 + $0x20] sm:$0xff]   ;;  %v865_v10 = vld [vmem:[%s974_s19 + $0x8] sm:$0xff]   ;;  %v867_v12 = vld [vmem:[%s974_s19 + $0x10] sm:$0xff]  }
  0x15   : > { %799 = vmatprep.mubr.bf16.mxu0 %v863_v4  ;;  %807 = vmatprep.mubr.bf16.mxu1 %v864_v5  ;;  %v866_v11 = vld [vmem:[%s974_s19 + $0x28] sm:$0xff]   ;;  %v868_v13 = vld [vmem:[%s974_s19 + $0x30] sm:$0xff]   ;;  %v869_v14 = vld [vmem:[%s974_s19 + $0x18] sm:$0xff]  }
  0x16   : > { %v870_v15 = vld [vmem:[%s974_s19 + $0x38] sm:$0xff]  }
  0x17   : > { %786 = vmatpush3.bf16.msra.mxu0 %v856_v1  ;;  %824 = vmatpush3.bf16.msra.mxu1 %v856_v1 }
  0x18   : > { %787 = vmatprep.subr.bf16.mxu0 %v857_v2  ;;  %817 = vmatprep.subr.bf16.mxu1 %v857_v2 }
  0x1b   : > { %788 = vmatpush3.bf16.msra.mxu0 %v857_v2  ;;  %825 = vmatpush3.bf16.msra.mxu1 %v857_v2 }
  0x1c   : > { %789 = vmatprep.subr.bf16.mxu0 %v858_v3  ;;  %818 = vmatprep.subr.bf16.mxu1 %v858_v3 }
  0x1f   : > { %790 = vmatpush3.bf16.msra.mxu0 %v858_v3  ;;  %826 = vmatpush3.bf16.msra.mxu1 %v858_v3 }
  0x20   : > { %791 = vmatprep.subr.bf16.mxu0 %v859_v6  ;;  %819 = vmatprep.subr.bf16.mxu1 %v859_v6 }
  0x23   : > { %792 = vmatpush3.bf16.msra.mxu0 %v859_v6  ;;  %827 = vmatpush3.bf16.msra.mxu1 %v859_v6 }
  0x24   : > { %793 = vmatprep.subr.bf16.mxu0 %v860_v7  ;;  %820 = vmatprep.subr.bf16.mxu1 %v860_v7 }
  0x27   : > { %794 = vmatpush3.bf16.msra.mxu0 %v860_v7  ;;  %828 = vmatpush3.bf16.msra.mxu1 %v860_v7 }
  0x28   : > { %795 = vmatprep.subr.bf16.mxu0 %v861_v8  ;;  %821 = vmatprep.subr.bf16.mxu1 %v861_v8 }
  0x2b   : > { %796 = vmatpush3.bf16.msra.mxu0 %v861_v8  ;;  %829 = vmatpush3.bf16.msra.mxu1 %v861_v8 }
  0x2c   : > { %797 = vmatprep.subr.bf16.mxu0 %v862_v9  ;;  %822 = vmatprep.subr.bf16.mxu1 %v862_v9 }
  0x2f   : > { %798 = vmatpush3.bf16.msra.mxu0 %v862_v9  ;;  %830 = vmatpush3.bf16.msra.mxu1 %v862_v9 }
  0x32   : > { %800 = vmatmul.mubr.bf16.vlgmr.msra.gmra.mrb[0].mxu0 %v865_v10  ;;  %808 = vmatmul.mubr.bf16.vlgmr.msra.gmra.mrb[0].mxu1 %v866_v11 }
  0x33   : > { %803 = vmatprep.mubr.bf16.mxu0 %v867_v12  ;;  %811 = vmatprep.mubr.bf16.mxu1 %v868_v13 }
  0x3a   : > { %804 = vmatmul.mubr.bf16.gmra.mrb[4].mxu0 %v869_v14  ;;  %812 = vmatmul.mubr.bf16.gmra.mrb[4].mxu1 %v870_v15 }
 0x105   : > { %v801_v16 = vpop.f32.mrb[0].mxu0  ;;  %v809_v17 = vpop.f32.mrb[0].mxu1 }
 0x106   : > { %871 = vtanh.f32 %v801_v16  ;;  %v462_v18 = vpop.f32.mrb[1].mxu0  ;;  %v494_v19 = vpop.f32.mrb[1].mxu1 }
 0x107   : > { %873 = vtanh.f32 %v809_v17  ;;  %v802_v20 = vpop.f32.mrb[2].mxu0  ;;  %v810_v21 = vpop.f32.mrb[2].mxu1 }
 0x108   : > { %875 = vtanh.f32 %v462_v18  ;;  %v465_v22 = vpop.f32.mrb[3].mxu0  ;;  %v497_v23 = vpop.f32.mrb[3].mxu1 }
 0x109   : > { %877 = vtanh.f32 %v494_v19 }
 0x10a   : > { %879 = vtanh.f32 %v802_v20 }
 0x10b   : > { %881 = vtanh.f32 %v810_v21 }
 0x10c   : > { %883 = vtanh.f32 %v465_v22 }
 0x10d   : > { %885 = vtanh.f32 %v497_v23  ;;  %v805_v24 = vpop.f32.mrb[4].mxu0  ;;  %v813_v25 = vpop.f32.mrb[4].mxu1 }
 0x10e   : > { %887 = vtanh.f32 %v805_v24  ;;  %v478_v26 = vpop.f32.mrb[5].mxu0  ;;  %v510_v27 = vpop.f32.mrb[5].mxu1 }
 0x10f   : > { %889 = vtanh.f32 %v813_v25  ;;  %v806_v28 = vpop.f32.mrb[6].mxu0  ;;  %v814_v29 = vpop.f32.mrb[6].mxu1 }
 0x110   : > { %v872_v30 = vpop.eup %871  ;;  %891 = vtanh.f32 %v478_v26  ;;  %v481_v31 = vpop.f32.mrb[7].mxu0 }
 0x111   : > { %v513_v32 = vpop.f32.mrb[7].mxu1  ;;  %v874_v33 = vpop.eup %873  ;;  %594 = vst [vmem:[%s993_s23 + $0x10] sm:$0xff] %v872_v30  ;;  %893 = vtanh.f32 %v510_v27 }
 0x112   : > { %v876_v34 = vpop.eup %875  ;;  %602 = vst [vmem:[%s993_s23 + $0x50] sm:$0xff] %v874_v33  ;;  %895 = vtanh.f32 %v806_v28 }
 0x113   : > { %v878_v35 = vpop.eup %877  ;;  %592 = vst [vmem:[%s993_s23] sm:$0xff] %v876_v34  ;;  %897 = vtanh.f32 %v814_v29 }
 0x114   : > { %v880_v36 = vpop.eup %879  ;;  %600 = vst [vmem:[%s993_s23 + $0x40] sm:$0xff] %v878_v35  ;;  %899 = vtanh.f32 %v481_v31 }
 0x115   : > { %v882_v37 = vpop.eup %881  ;;  %595 = vst [vmem:[%s993_s23 + $0x18] sm:$0xff] %v880_v36  ;;  %901 = vtanh.f32 %v513_v32 }
 0x116   : > { %v884_v38 = vpop.eup %883  ;;  %603 = vst [vmem:[%s993_s23 + $0x58] sm:$0xff] %v882_v37 }
 0x117   : > { %v886_v39 = vpop.eup %885  ;;  %593 = vst [vmem:[%s993_s23 + $0x8] sm:$0xff] %v884_v38 }
 0x118   : > { %v888_v40 = vpop.eup %887  ;;  %601 = vst [vmem:[%s993_s23 + $0x48] sm:$0xff] %v886_v39 }
 0x119   : > { %v890_v41 = vpop.eup %889  ;;  %598 = vst [vmem:[%s993_s23 + $0x30] sm:$0xff] %v888_v40 }
 0x11a   : > { %v892_v42 = vpop.eup %891  ;;  %606 = vst [vmem:[%s993_s23 + $0x70] sm:$0xff] %v890_v41 }
 0x11b   : > { %v894_v43 = vpop.eup %893  ;;  %596 = vst [vmem:[%s993_s23 + $0x20] sm:$0xff] %v892_v42 }
 0x11c   : > { %v896_v44 = vpop.eup %895  ;;  %604 = vst [vmem:[%s993_s23 + $0x60] sm:$0xff] %v894_v43 }
 0x11d   : > { %v898_v45 = vpop.eup %897  ;;  %599 = vst [vmem:[%s993_s23 + $0x38] sm:$0xff] %v896_v44 }
 0x11e   : > { %v900_v46 = vpop.eup %899  ;;  %607 = vst [vmem:[%s993_s23 + $0x78] sm:$0xff] %v898_v45 }
 0x11f   : > { %v902_v47 = vpop.eup %901  ;;  %597 = vst [vmem:[%s993_s23 + $0x28] sm:$0xff] %v900_v46 }
 0x120   : > { %605 = vst [vmem:[%s993_s23 + $0x68] sm:$0xff] %v902_v47 }
 0x121 PF: > { %s12_s11 = sadd.s32 1, %s925_s11   ;;  %s1023_s9 = smov %s921_s10 }
 0x122   : > { %p9_p5 = scmp.ge.s32.totalorder %s12_s11, 6   ;;  %s1024_s10 = smov %s1026_s12 }
 0x124   :  { %11 = sbr.rel (!%p9_p5) target bundleno = 2 (0x2), region = 69 }

</bundles_post_ra>
